<compile_context>
chip_gen: v7x
topology: tpu7x:2x2x1
jax: 0.10.0
libtpu: 0.0.40
codegen_flags: <defaults>
</compile_context>

<pallas_src>
import functools

import numpy as np
import jax
import jax.numpy as jnp
from jax.experimental import pallas as pl
from jax.experimental.pallas import tpu as pltpu

LANE = 128       # TPU lane width (last dim)
SUB_BF16 = 16    # bf16 sublane packing (second-to-last dim)


def _round_up(x, m):
    return (x + m - 1) // m * m


# ----------------------------- fused Pallas kernel ---------------------------------

def _fused_gcn_kernel(a_ref, x_ref, pm_ref, gw_ref, gb_ref,
                      w1_ref, b1_ref, w2_ref, b2_ref, o_ref, *, num_layers):
    """GB graphs per grid step: all GCN layers + global_add_pool + MLP head, fused.

    a_ref : (GB, NP, NP)    bf16  per-graph D^-1/2 (A+I) D^-1/2 diagonal blocks
    x_ref : (GB, NP, DP)    bf16  padded node features
    pm_ref: (1, GB, GB*NP)  bf16  block-diagonal pooling mask ({0,1}, real nodes only)
    gw_ref: (L, DP, DP)     bf16  stacked GCN weights  (grid-invariant, single-buffered)
    gb_ref: (L, 1, DP)      f32   stacked GCN biases
    w1/b1 : (DP, H2P) bf16 / (1, H2P) f32   lin1
    w2/b2 : (H2P, OUTP) bf16 / (1, OUTP) f32  lin2 with eval-BN folded in
    o_ref : (GB, OUTP)      f32   lane-dense output (real prediction in column 0)
    """
    gbk, np_pad, dp = x_ref.shape
    a = a_ref[...]                                     # (GB, NP, NP)
    h = x_ref[...].reshape(gbk * np_pad, dp)           # stacked node rows: M = GB*NP

    # GCN layers: H stays on-chip; ReLU between layers, none after the last conv.
    for i in range(num_layers):                        # static unroll
        # Shared-weight matmul hoisted over all GB graphs: one large (GB*NP, DP) x (DP, DP).
        xw = jnp.dot(h, gw_ref[i], preferred_element_type=jnp.float32)
        # Block-diagonal A @ (XW): batched over the per-graph diagonal blocks only.
        z = jnp.einsum('gij,gjd->gid', a,
                       xw.astype(jnp.bfloat16).reshape(gbk, np_pad, dp),
                       preferred_element_type=jnp.float32)
        z = z.reshape(gbk * np_pad, dp) + gb_ref[i]
        if i < num_layers - 1:
            z = jnp.maximum(z, 0.0)
        h = z.astype(jnp.bfloat16)

    # global_add_pool of all GB graphs in one M=GB matmul (block-diagonal mask zeroes pad rows
    # and cross-graph rows).
    g = jnp.dot(pm_ref[0], h, preferred_element_type=jnp.float32)          # (GB, DP)

    # lin1 -> (ff_dropout = identity in eval) -> ReLU
    z = jnp.dot(g.astype(jnp.bfloat16), w1_ref[...],
                preferred_element_type=jnp.float32) + b1_ref[...]
    z = jnp.maximum(z, 0.0)

    # eval BatchNorm1d folded into lin2' at trace time.
    o_ref[...] = jnp.dot(z.astype(jnp.bfloat16), w2_ref[...],
                         preferred_element_type=jnp.float32) + b2_ref[...]  # (GB, OUTP)


# ------------------------------- forward wrapper ------------------------------------

@functools.partial(jax.jit, static_argnames=("num_graphs", "max_nodes", "graphs_per_block"))
def gcn_model_forward(x, edge_index, batch, params, *, num_graphs, max_nodes,
                      graphs_per_block=16):
    """Jitted preprocessing (graph packing, param padding, BN fold) + one pallas_call.

    `max_nodes` (static) must be >= the largest per-graph node count; `batch` must be sorted by
    graph id (PyG layout).  graphs_per_block: pick so graphs_per_block*np_pad >= 256 on v6e/v7x
    (>= 128 is enough on v5e), keeping num_graphs/graphs_per_block >= 2 for v7x's two TCs.
    """
    num_layers = len(params["gcn_w"])
    n, f = x.shape
    hidden = params["gcn_w"][0].shape[1]

    gbk = graphs_per_block
    np_pad = max(_round_up(max_nodes, SUB_BF16), SUB_BF16)       # static
    dp = max(_round_up(f, LANE), _round_up(hidden, LANE))        # common padded feature width
    h2p = _round_up(64, LANE)                                    # lin1 output width
    outp = LANE                                                  # lane-dense head output width
    gp = _round_up(num_graphs, gbk)                              # graphs padded to block multiple
    nblk = gp // gbk

    # ---- per-graph packing (graphs are independent -> block-diagonal adjacency) ----
    batch = batch.astype(jnp.int32)
    starts = jnp.searchsorted(batch, jnp.arange(num_graphs, dtype=jnp.int32)).astype(jnp.int32)
    pos = jnp.arange(n, dtype=jnp.int32) - starts[batch]         # node index within its graph

    src = edge_index[0].astype(jnp.int32)
    dst = edge_index[1].astype(jnp.int32)
    a = jnp.zeros((gp, np_pad, np_pad), jnp.float32)
    a = a.at[batch[dst], pos[dst], pos[src]].add(1.0)            # messages flow src -> dst (row=dst)

    node_mask = jnp.zeros((gp, np_pad), jnp.float32).at[batch, pos].set(1.0)

    # add_remaining_self_loops: only add a self-loop where none exists (real nodes only).
    idx = jnp.arange(np_pad)
    diag = a[:, idx, idx]
    a = a.at[:, idx, idx].add(jnp.where((diag <= 0.0) & (node_mask > 0.0), 1.0, 0.0))

    deg = a.sum(axis=-1)
    dinv = jnp.where(deg > 0.0, jax.lax.rsqrt(deg), 0.0)
    a = a * dinv[:, :, None] * dinv[:, None, :]                  # D^-1/2 (A+I) D^-1/2 per block

    x_pad = jnp.zeros((gp, np_pad, dp), jnp.float32).at[batch, pos, :f].set(x)

    # Block-diagonal pooling mask: pm[blk, j, j*np_pad + p] = 1 iff node p of graph j is real.
    nm = node_mask.reshape(nblk, gbk, np_pad)
    eye_g = jnp.eye(gbk, dtype=jnp.float32)
    pm = (eye_g[None, :, :, None] * nm[:, None, :, :]).reshape(nblk, gbk, gbk * np_pad)

    # ---- pad / stack parameters, fold eval BatchNorm into lin2 ----
    # NOTE: hidden=32 padded to 128 lanes wastes 75% of K/N lanes; unavoidable unless the model
    # uses a multiple-of-128 hidden width -- utilization is recovered via the M (graph) dimension.
    gw = jnp.zeros((num_layers, dp, dp), jnp.float32)
    gb = jnp.zeros((num_layers, 1, dp), jnp.float32)
    for i in range(num_layers):
        wi = params["gcn_w"][i]
        gw = gw.at[i, :wi.shape[0], :wi.shape[1]].set(wi)
        gb = gb.at[i, 0, :hidden].set(params["gcn_b"][i])

    w1 = jnp.zeros((dp, h2p), jnp.float32).at[:hidden, :64].set(params["lin1_w"])
    b1 = jnp.zeros((1, h2p), jnp.float32).at[0, :64].set(params["lin1_b"])

    s = params["bn_gamma"] * jax.lax.rsqrt(params["bn_var"] + 1e-5)                  # (64,)
    w2f = params["lin2_w"] * s[:, None]                                              # (64, 1)
    b2f = params["lin2_b"] + (params["bn_beta"] - s * params["bn_mean"]) @ params["lin2_w"]
    w2 = jnp.zeros((h2p, outp), jnp.float32).at[:64, :1].set(w2f)
    b2 = jnp.zeros((1, outp), jnp.float32).at[0, :1].set(b2f)

    kernel = functools.partial(_fused_gcn_kernel, num_layers=num_layers)

    # Grid-invariant parameter inputs -> single-buffered (their index_map is constant).
    once = pl.Buffered(1)

    out = pl.pallas_call(
        kernel,
        out_shape=jax.ShapeDtypeStruct((gp, outp), jnp.float32),
        grid=(nblk,),
        in_specs=[
            pl.BlockSpec((gbk, np_pad, np_pad), lambda g: (g, 0, 0)),          # A diag blocks
            pl.BlockSpec((gbk, np_pad, dp), lambda g: (g, 0, 0)),              # X blocks
            pl.BlockSpec((1, gbk, gbk * np_pad), lambda g: (g, 0, 0)),         # pool mask
            pl.BlockSpec((num_layers, dp, dp), lambda g: (0, 0, 0), pipeline_mode=once),
            pl.BlockSpec((num_layers, 1, dp), lambda g: (0, 0, 0), pipeline_mode=once),
            pl.BlockSpec((dp, h2p), lambda g: (0, 0), pipeline_mode=once),     # lin1 W
            pl.BlockSpec((1, h2p), lambda g: (0, 0), pipeline_mode=once),      # lin1 b
            pl.BlockSpec((h2p, outp), lambda g: (0, 0), pipeline_mode=once),   # lin2 W (BN folded)
            pl.BlockSpec((1, outp), lambda g: (0, 0), pipeline_mode=once),     # lin2 b (BN folded)
        ],
        out_specs=pl.BlockSpec((gbk, outp), lambda g: (g, 0)),
        compiler_params=pltpu.CompilerParams(
            dimension_semantics=("parallel",),          # graph blocks are independent
            vmem_limit_bytes=64 * 1024 * 1024),
    )(a.astype(jnp.bfloat16), x_pad.astype(jnp.bfloat16), pm.astype(jnp.bfloat16),
      gw.astype(jnp.bfloat16), gb, w1.astype(jnp.bfloat16), b1, w2.astype(jnp.bfloat16), b2)

    return out[:num_graphs, :1]                                  # (num_graphs, 1) f32


# ------------------------------- pure-JAX reference -----------------------------------

def reference_forward(x, edge_index, batch, params, num_graphs):
    """f32 reference mirroring the PyTorch eval forward (for a tolerance check)."""
    n = x.shape[0]
    src, dst = edge_index[0], edge_index[1]
    a = jnp.zeros((n, n), jnp.float32).at[dst, src].add(1.0)
    diag = jnp.diagonal(a)
    a = a + jnp.diag(jnp.where(diag > 0.0, 0.0, 1.0))            # add_remaining_self_loops
    deg = a.sum(-1)
    dinv = jnp.where(deg > 0.0, 1.0 / jnp.sqrt(deg), 0.0)
    a = a * dinv[:, None] * dinv[None, :]

    h = x
    num_layers = len(params["gcn_w"])
    for i in range(num_layers):
        h = a @ (h @ params["gcn_w"][i]) + params["gcn_b"][i]
        if i < num_layers - 1:
            h = jax.nn.relu(h)
    g = jax.ops.segment_sum(h, batch, num_segments=num_graphs)
    z = jax.nn.relu(g @ params["lin1_w"] + params["lin1_b"])
    s = params["bn_gamma"] / jnp.sqrt(params["bn_var"] + 1e-5)
    z = s * (z - params["bn_mean"]) + params["bn_beta"]
    return z @ params["lin2_w"] + params["lin2_b"]


# --------------------------------- params & main -------------------------------------

def init_params(key, in_channels, hidden_channels, num_layers):
    keys = iter(jax.random.split(key, 2 * num_layers + 8))
    params = {"gcn_w": [], "gcn_b": []}
    f = in_channels
    for _ in range(num_layers):
        params["gcn_w"].append(
            0.1 * jax.random.normal(next(keys), (f, hidden_channels), jnp.float32))
        params["gcn_b"].append(
            0.05 * jax.random.normal(next(keys), (hidden_channels,), jnp.float32))
        f = hidden_channels
    params["lin1_w"] = 0.1 * jax.random.normal(next(keys), (hidden_channels, 64), jnp.float32)
    params["lin1_b"] = 0.05 * jax.random.normal(next(keys), (64,), jnp.float32)
    params["lin2_w"] = 0.1 * jax.random.normal(next(keys), (64, 1), jnp.float32)
    params["lin2_b"] = 0.05 * jax.random.normal(next(keys), (1,), jnp.float32)
    # BatchNorm1d(64): affine params + running stats (eval mode)
    params["bn_gamma"] = 1.0 + 0.1 * jax.random.normal(next(keys), (64,), jnp.float32)
    params["bn_beta"] = 0.05 * jax.random.normal(next(keys), (64,), jnp.float32)
    params["bn_mean"] = 0.1 * jax.random.normal(next(keys), (64,), jnp.float32)
    params["bn_var"] = 1.0 + 0.2 * jax.random.uniform(next(keys), (64,), jnp.float32)
    # NOTE: mol_lin*/bcl_lin1/mol_batch_norm exist in __init__ but are unused when with_bcl=False.
    return params


if __name__ == "__main__":
    in_channels = 8
    hidden_channels = 32
    num_layers = 2
    num_graphs = 32
    max_nodes = 8                 # static max nodes per graph (no host sync / recompiles)
    graphs_per_block = 16         # 16 graphs * 16 padded rows = 256-row matmuls; 2 grid steps

    key = jax.random.PRNGKey(0)
    k_x, k_p = jax.random.split(key)

    # Graph sizes cycle 5..8; undirected chain edges within each graph (both directions).
    # `batch` is sorted by graph id (PyG layout) by construction.
    sizes = [5 + (i % 4) for i in range(num_graphs)]
    src_list, dst_list, batch_list = [], [], []
    base = 0
    for gi, sz in enumerate(sizes):
        batch_list += [gi] * sz
        for i in range(sz - 1):
            src_list += [base + i, base + i + 1]
            dst_list += [base + i + 1, base + i]
        base += sz
    n = base                                                        # 208 nodes

    x = jax.random.normal(k_x, (n, in_channels), jnp.float32)
    edge_index = jnp.array([src_list, dst_list], dtype=jnp.int32)   # (2, 352)
    batch = jnp.array(batch_list, dtype=jnp.int32)                  # (208,)

    params = init_params(k_p, in_channels, hidden_channels, num_layers)

    pred = gcn_model_forward(x, edge_index, batch, params,
                             num_graphs=num_graphs, max_nodes=max_nodes,
                             graphs_per_block=graphs_per_block)
    pred = jax.block_until_ready(pred)
    assert pred.shape == (num_graphs, 1), pred.shape
    assert pred.dtype == jnp.float32

    ref = jax.block_until_ready(reference_forward(x, edge_index, batch, params, num_graphs))
    np.testing.assert_allclose(np.asarray(pred), np.asarray(ref), rtol=5e-2, atol=5e-2)

    print("KERNEL_OK")
</pallas_src>

<mosaic_0001>
module attributes {stable_mosaic.version = 11 : i64} {
  func.func private @main(%arg0: i32) attributes {dimension_semantics = [#tpu.dimension_semantics<core_parallel>], iteration_bounds = array<i64: 2>, tpu.core_type = #tpu.core_type<sc_scalar_subcore>, window_params = []} {
    return
  }
}

module attributes {stable_mosaic.version = 11 : i64} {
  func.func private @main(%arg0: i32) attributes {dimension_semantics = [#tpu.dimension_semantics<core_parallel>], iteration_bounds = array<i64: 2>, tpu.core_type = #tpu.core_type<sc_scalar_subcore>, window_params = []} {
    return
  }
}

module attributes {stable_mosaic.version = 11 : i64} {
  func.func @_fused_gcn_kernel(%arg0: i32, %arg1: memref<16x16x16xbf16, #tpu.memory_space<vmem>>, %arg2: memref<16x16x128xbf16, #tpu.memory_space<vmem>>, %arg3: memref<1x16x256xbf16, #tpu.memory_space<vmem>>, %arg4: memref<2x128x128xbf16, #tpu.memory_space<vmem>>, %arg5: memref<2x1x128xf32, #tpu.memory_space<vmem>>, %arg6: memref<128x128xbf16, #tpu.memory_space<vmem>>, %arg7: memref<1x128xf32, #tpu.memory_space<vmem>>, %arg8: memref<128x128xbf16, #tpu.memory_space<vmem>>, %arg9: memref<1x128xf32, #tpu.memory_space<vmem>>, %arg10: memref<16x128xf32, #tpu.memory_space<vmem>>) attributes {dimension_semantics = [#tpu.dimension_semantics<parallel>], iteration_bounds = array<i64: 2>, scalar_prefetch = 0 : i64, scratch_operands = 0 : i64, tpu.core_type = #tpu.core_type<tc>, window_params = [{transform_indices = @transform_0, window_bounds = array<i64: 16, 16, 16>}, {transform_indices = @transform_1, window_bounds = array<i64: 16, 16, 128>}, {transform_indices = @transform_2, window_bounds = array<i64: 1, 16, 256>}, {pipeline_mode = #tpu.pipeline_mode<synchronous>, transform_indices = @transform_3, window_bounds = array<i64: 2, 128, 128>}, {pipeline_mode = #tpu.pipeline_mode<synchronous>, transform_indices = @transform_4, window_bounds = array<i64: 2, 1, 128>}, {pipeline_mode = #tpu.pipeline_mode<synchronous>, transform_indices = @transform_5, window_bounds = array<i64: 128, 128>}, {pipeline_mode = #tpu.pipeline_mode<synchronous>, transform_indices = @transform_6, window_bounds = array<i64: 1, 128>}, {pipeline_mode = #tpu.pipeline_mode<synchronous>, transform_indices = @transform_7, window_bounds = array<i64: 128, 128>}, {pipeline_mode = #tpu.pipeline_mode<synchronous>, transform_indices = @transform_8, window_bounds = array<i64: 1, 128>}, {transform_indices = @transform_9, window_bounds = array<i64: 16, 128>}]} {
    %c0 = arith.constant 0 : index
    %c0_0 = arith.constant 0 : index
    %c0_1 = arith.constant 0 : index
    %0 = vector.load %arg1[%c0, %c0_0, %c0_1] : memref<16x16x16xbf16, #tpu.memory_space<vmem>>, vector<16x16x16xbf16>
    %c0_2 = arith.constant 0 : index
    %c0_3 = arith.constant 0 : index
    %c0_4 = arith.constant 0 : index
    %1 = vector.load %arg2[%c0_2, %c0_3, %c0_4] : memref<16x16x128xbf16, #tpu.memory_space<vmem>>, vector<16x16x128xbf16>
    %2 = vector.shape_cast %1 : vector<16x16x128xbf16> to vector<256x128xbf16>
    %c0_5 = arith.constant 0 : index
    %c0_6 = arith.constant 0 : index
    %c0_7 = arith.constant 0 : index
    %3 = vector.load %arg4[%c0_5, %c0_6, %c0_7] : memref<2x128x128xbf16, #tpu.memory_space<vmem>>, vector<1x128x128xbf16>
    %4 = vector.shape_cast %3 : vector<1x128x128xbf16> to vector<128x128xbf16>
    %cst = arith.constant dense<0.000000e+00> : vector<256x128xf32>
    %5 = tpu.matmul %2, %4, %cst {dimension_numbers = #tpu.dot_dimension_numbers<[1], [0], [0], [1], [0, 0, 1, 1], [], []>} : vector<256x128xbf16>, vector<128x128xbf16>, vector<256x128xf32> -> vector<256x128xf32>
    %6 = arith.truncf %5 : vector<256x128xf32> to vector<256x128xbf16>
    %7 = vector.shape_cast %6 : vector<256x128xbf16> to vector<16x16x128xbf16>
    "tpu.trace_start"() <{level = 10 : i32, message = "gij,gjd->gid"}> : () -> ()
    %cst_8 = arith.constant dense<0.000000e+00> : vector<16x16x128xf32>
    %8 = tpu.matmul %0, %7, %cst_8 {dimension_numbers = #tpu.dot_dimension_numbers<[2], [1], [1], [2], [0, 0, 0, 1, 1, 2], [0], [0]>} : vector<16x16x16xbf16>, vector<16x16x128xbf16>, vector<16x16x128xf32> -> vector<16x16x128xf32>
    "tpu.trace_stop"() : () -> ()
    %9 = vector.shape_cast %8 : vector<16x16x128xf32> to vector<256x128xf32>
    %c0_9 = arith.constant 0 : index
    %c0_10 = arith.constant 0 : index
    %c0_11 = arith.constant 0 : index
    %10 = vector.load %arg5[%c0_9, %c0_10, %c0_11] : memref<2x1x128xf32, #tpu.memory_space<vmem>>, vector<1x1x128xf32>
    %11 = vector.shape_cast %10 : vector<1x1x128xf32> to vector<1x128xf32>
    %12 = vector.broadcast %11 : vector<1x128xf32> to vector<256x128xf32>
    %13 = arith.addf %9, %12 : vector<256x128xf32>
    %cst_12 = arith.constant 0.000000e+00 : f32
    %14 = vector.broadcast %cst_12 : f32 to vector<256x128xf32>
    %15 = arith.maximumf %13, %14 : vector<256x128xf32>
    %16 = arith.truncf %15 : vector<256x128xf32> to vector<256x128xbf16>
    %c1 = arith.constant 1 : index
    %c0_13 = arith.constant 0 : index
    %c0_14 = arith.constant 0 : index
    %17 = vector.load %arg4[%c1, %c0_13, %c0_14] : memref<2x128x128xbf16, #tpu.memory_space<vmem>>, vector<1x128x128xbf16>
    %18 = vector.shape_cast %17 : vector<1x128x128xbf16> to vector<128x128xbf16>
    %cst_15 = arith.constant dense<0.000000e+00> : vector<256x128xf32>
    %19 = tpu.matmul %16, %18, %cst_15 {dimension_numbers = #tpu.dot_dimension_numbers<[1], [0], [0], [1], [0, 0, 1, 1], [], []>} : vector<256x128xbf16>, vector<128x128xbf16>, vector<256x128xf32> -> vector<256x128xf32>
    %20 = arith.truncf %19 : vector<256x128xf32> to vector<256x128xbf16>
    %21 = vector.shape_cast %20 : vector<256x128xbf16> to vector<16x16x128xbf16>
    "tpu.trace_start"() <{level = 10 : i32, message = "gij,gjd->gid"}> : () -> ()
    %cst_16 = arith.constant dense<0.000000e+00> : vector<16x16x128xf32>
    %22 = tpu.matmul %0, %21, %cst_16 {dimension_numbers = #tpu.dot_dimension_numbers<[2], [1], [1], [2], [0, 0, 0, 1, 1, 2], [0], [0]>} : vector<16x16x16xbf16>, vector<16x16x128xbf16>, vector<16x16x128xf32> -> vector<16x16x128xf32>
    "tpu.trace_stop"() : () -> ()
    %23 = vector.shape_cast %22 : vector<16x16x128xf32> to vector<256x128xf32>
    %c1_17 = arith.constant 1 : index
    %c0_18 = arith.constant 0 : index
    %c0_19 = arith.constant 0 : index
    %24 = vector.load %arg5[%c1_17, %c0_18, %c0_19] : memref<2x1x128xf32, #tpu.memory_space<vmem>>, vector<1x1x128xf32>
    %25 = vector.shape_cast %24 : vector<1x1x128xf32> to vector<1x128xf32>
    %26 = vector.broadcast %25 : vector<1x128xf32> to vector<256x128xf32>
    %27 = arith.addf %23, %26 : vector<256x128xf32>
    %28 = arith.truncf %27 : vector<256x128xf32> to vector<256x128xbf16>
    %c0_20 = arith.constant 0 : index
    %c0_21 = arith.constant 0 : index
    %c0_22 = arith.constant 0 : index
    %29 = vector.load %arg3[%c0_20, %c0_21, %c0_22] : memref<1x16x256xbf16, #tpu.memory_space<vmem>>, vector<1x16x256xbf16>
    %30 = vector.shape_cast %29 : vector<1x16x256xbf16> to vector<16x256xbf16>
    %cst_23 = arith.constant dense<0.000000e+00> : vector<16x128xf32>
    %31 = tpu.matmul %30, %28, %cst_23 {dimension_numbers = #tpu.dot_dimension_numbers<[1], [0], [0], [1], [0, 0, 1, 1], [], []>} : vector<16x256xbf16>, vector<256x128xbf16>, vector<16x128xf32> -> vector<16x128xf32>
    %32 = arith.truncf %31 : vector<16x128xf32> to vector<16x128xbf16>
    %c0_24 = arith.constant 0 : index
    %c0_25 = arith.constant 0 : index
    %33 = vector.load %arg6[%c0_24, %c0_25] : memref<128x128xbf16, #tpu.memory_space<vmem>>, vector<128x128xbf16>
    %cst_26 = arith.constant dense<0.000000e+00> : vector<16x128xf32>
    %34 = tpu.matmul %32, %33, %cst_26 {dimension_numbers = #tpu.dot_dimension_numbers<[1], [0], [0], [1], [0, 0, 1, 1], [], []>} : vector<16x128xbf16>, vector<128x128xbf16>, vector<16x128xf32> -> vector<16x128xf32>
    %c0_27 = arith.constant 0 : index
    %c0_28 = arith.constant 0 : index
    %35 = vector.load %arg7[%c0_27, %c0_28] : memref<1x128xf32, #tpu.memory_space<vmem>>, vector<1x128xf32>
    %36 = vector.broadcast %35 : vector<1x128xf32> to vector<16x128xf32>
    %37 = arith.addf %34, %36 : vector<16x128xf32>
    %cst_29 = arith.constant 0.000000e+00 : f32
    %38 = vector.broadcast %cst_29 : f32 to vector<16x128xf32>
    %39 = arith.maximumf %37, %38 : vector<16x128xf32>
    %40 = arith.truncf %39 : vector<16x128xf32> to vector<16x128xbf16>
    %c0_30 = arith.constant 0 : index
    %c0_31 = arith.constant 0 : index
    %41 = vector.load %arg8[%c0_30, %c0_31] : memref<128x128xbf16, #tpu.memory_space<vmem>>, vector<128x128xbf16>
    %cst_32 = arith.constant dense<0.000000e+00> : vector<16x128xf32>
    %42 = tpu.matmul %40, %41, %cst_32 {dimension_numbers = #tpu.dot_dimension_numbers<[1], [0], [0], [1], [0, 0, 1, 1], [], []>} : vector<16x128xbf16>, vector<128x128xbf16>, vector<16x128xf32> -> vector<16x128xf32>
    %c0_33 = arith.constant 0 : index
    %c0_34 = arith.constant 0 : index
    %43 = vector.load %arg9[%c0_33, %c0_34] : memref<1x128xf32, #tpu.memory_space<vmem>>, vector<1x128xf32>
    %44 = vector.broadcast %43 : vector<1x128xf32> to vector<16x128xf32>
    %45 = arith.addf %42, %44 : vector<16x128xf32>
    %c0_35 = arith.constant 0 : index
    %c0_36 = arith.constant 0 : index
    %46 = vector.load %arg10[%c0_35, %c0_36] : memref<16x128xf32, #tpu.memory_space<vmem>>, vector<16x128xf32>
    tpu.vector_store %arg10[%c0_35, %c0_36], %45 {strides = array<i32>} : memref<16x128xf32, #tpu.memory_space<vmem>>, vector<16x128xf32>,
    return
  }
  func.func @transform_0(%arg0: i32) -> (i32, i32, i32) {
    %c0_i32 = arith.constant 0 : i32
    %c0_i32_0 = arith.constant 0 : i32
    %c0_i32_1 = arith.constant 0 : i32
    return %arg0, %c0_i32, %c0_i32_0 : i32, i32, i32
  }
  func.func @transform_1(%arg0: i32) -> (i32, i32, i32) {
    %c0_i32 = arith.constant 0 : i32
    %c0_i32_0 = arith.constant 0 : i32
    %c0_i32_1 = arith.constant 0 : i32
    return %arg0, %c0_i32, %c0_i32_0 : i32, i32, i32
  }
  func.func @transform_2(%arg0: i32) -> (i32, i32, i32) {
    %c0_i32 = arith.constant 0 : i32
    %c0_i32_0 = arith.constant 0 : i32
    %c0_i32_1 = arith.constant 0 : i32
    return %arg0, %c0_i32, %c0_i32_0 : i32, i32, i32
  }
  func.func @transform_3(%arg0: i32) -> (i32, i32, i32) {
    %c0_i32 = arith.constant 0 : i32
    %c0_i32_0 = arith.constant 0 : i32
    %c0_i32_1 = arith.constant 0 : i32
    %c0_i32_2 = arith.constant 0 : i32
    return %c0_i32, %c0_i32_0, %c0_i32_1 : i32, i32, i32
  }
  func.func @transform_4(%arg0: i32) -> (i32, i32, i32) {
    %c0_i32 = arith.constant 0 : i32
    %c0_i32_0 = arith.constant 0 : i32
    %c0_i32_1 = arith.constant 0 : i32
    %c0_i32_2 = arith.constant 0 : i32
    return %c0_i32, %c0_i32_0, %c0_i32_1 : i32, i32, i32
  }
  func.func @transform_5(%arg0: i32) -> (i32, i32) {
    %c0_i32 = arith.constant 0 : i32
    %c0_i32_0 = arith.constant 0 : i32
    %c0_i32_1 = arith.constant 0 : i32
    return %c0_i32, %c0_i32_0 : i32, i32
  }
  func.func @transform_6(%arg0: i32) -> (i32, i32) {
    %c0_i32 = arith.constant 0 : i32
    %c0_i32_0 = arith.constant 0 : i32
    %c0_i32_1 = arith.constant 0 : i32
    return %c0_i32, %c0_i32_0 : i32, i32
  }
  func.func @transform_7(%arg0: i32) -> (i32, i32) {
    %c0_i32 = arith.constant 0 : i32
    %c0_i32_0 = arith.constant 0 : i32
    %c0_i32_1 = arith.constant 0 : i32
    return %c0_i32, %c0_i32_0 : i32, i32
  }
  func.func @transform_8(%arg0: i32) -> (i32, i32) {
    %c0_i32 = arith.constant 0 : i32
    %c0_i32_0 = arith.constant 0 : i32
    %c0_i32_1 = arith.constant 0 : i32
    return %c0_i32, %c0_i32_0 : i32, i32
  }
  func.func @transform_9(%arg0: i32) -> (i32, i32) {
    %c0_i32 = arith.constant 0 : i32
    %c0_i32_0 = arith.constant 0 : i32
    return %arg0, %c0_i32 : i32, i32
  }
}

</mosaic_0001>

<bundles_post_ra>
// kernel: custom-call.8
= control target key start
LH: loop header
LB: loop body
LE: loop exit
PB: predicated region body
PF: predicated region fallthrough
CT: control target
= control target key end

     0   :  { %s6_s0 = inlined_call_operand.vmem [shape: u32[32], index: 0, kind: output, shape index: {}]  }

// kernel: gcn_model_forward.1
= control target key start
LH: loop header
LB: loop body
LE: loop exit
PB: predicated region body
PF: predicated region fallthrough
CT: control target
= control target key end

     0   :  { %s5266_s0 = inlined_call_operand.hbm [shape: bf16[32,16,16], index: 0, kind: input, shape index: {}]   ;;  %s5267_s1 = inlined_call_operand.hbm [shape: bf16[32,16,128], index: 1, kind: input, shape index: {}]   ;;  %s5268_s2 = inlined_call_operand.hbm [shape: bf16[2,16,256], index: 2, kind: input, shape index: {}]   ;;  %s5269_s3 = inlined_call_operand.hbm [shape: bf16[2,128,128], index: 3, kind: input, shape index: {}]   ;;  %s5270_s4 = inlined_call_operand.hbm [shape: f32[2,1,128], index: 4, kind: input, shape index: {}]   ;;  %s5271_s5 = inlined_call_operand.hbm [shape: bf16[128,128], index: 5, kind: input, shape index: {}]   ;;  %s5272_s6 = inlined_call_operand.hbm [shape: f32[1,128], index: 6, kind: input, shape index: {}]   ;;  %s5273_s7 = inlined_call_operand.hbm [shape: bf16[128,128], index: 7, kind: input, shape index: {}]   ;;  %s5274_s8 = inlined_call_operand.hbm [shape: f32[1,128], index: 8, kind: input, shape index: {}]   ;;  %s5275_s9 = inlined_call_operand.hbm [shape: f32[32,128], index: 9, kind: output, shape index: {}]  }
   0x1   :  { %5304 = sst [smem:[#allocation31_spill]] %s5267_s1 }
   0x2   :  { %5305 = sst [smem:[#allocation32_spill]] %s5269_s3 }
   0x3   :  { %5306 = sst [smem:[#allocation33_spill]] %s5271_s5 }
   0x4   :  { %5307 = sst [smem:[#allocation34_spill]] %s5273_s7 }
   0x5   :  { %5308 = sst [smem:[#allocation35_spill]] %s5275_s9 }
   0x6   :  { %14 = vsyncpa [#allocation3], 0 }
   0x7   :  { %16 = vsyncpa [#allocation3 + $0x1], 0 }
   0x8   :  { %17 = vsyncpa [#allocation6], 0 }
   0x9   :  { %19 = vsyncpa [#allocation6 + $0x1], 0 }
   0xa   :  { %20 = vsyncpa [#allocation9], 0 }
   0xb   :  { %21 = vsyncpa [#allocation12], 0 }
   0xc   :  { %22 = vsyncpa [#allocation15], 0 }
   0xd   :  { %23 = vsyncpa [#allocation4], 0 }
   0xe   :  { %25 = vsyncpa [#allocation4 + $0x1], 0  ;;  %s4444_s30 = smov 0   ;;  %s4446_s10 = smov 0  }
   0xf   :  { %s4448_s11 = smov 0   ;;  %s4450_s12 = smov 0  }
  0x10 LB: > { %5309 = sst [smem:[#allocation24_spill]] %s4360_s30  ;;  %s4374_s13 = smov [#allocation8]   ;;  %s4372_s12 = sphi %s4450_s12, %s5352_s12   ;;  %s4368_s11 = sphi %s4448_s11, %s5354_s11   ;;  %s4364_s10 = sphi %s4446_s10, %s5356_s10   ;;  %s4360_s30 = sphi %s4444_s30, %s5355_s30  }
  0x11   : > { %5310 = sst [smem:[#allocation25_spill]] %s4368_s11  ;;  %s278_s14 = sshll.u32 %s4374_s13, 4  ;;  %s4470_s14 = int_to_ptr.vmem [resolvable:$true] %s278_s14 }
  0x12   : > { %s4465_s15 = sadd.s32 4294967295, %s4372_s12   ;;  %p3215_p0 = scmp.ge.s32.totalorder %s4372_s12, 1 }
  0x13   : > { %5311 = sst [smem:[#allocation26_spill]] %s4465_s15  ;;  %p5284_p1 = scmp.eq.s32.totalorder %s4465_s15, 0 }
  0x14   : > { %p266_p2 = scmp.lt.s32.totalorder %s4372_s12, 3  ;;  %s4375_s17 = smov [#allocation11]  }
  0x15   : > { %s304_s18 = sshll.u32 %s4375_s17, 4  ;;  %s4376_s20 = smov [#allocation14]   ;;  %s4485_s18 = int_to_ptr.vmem [resolvable:$true] %s304_s18 }
  0x16   : > { %p4472_p3 = pnand %p3215_p0, %p266_p2  ;;  %s328_s21 = sshll.u32 %s4376_s20, 4  ;;  %s4487_s21 = int_to_ptr.vmem [resolvable:$true] %s328_s21 }
  0x17   : > { %s5314_s3 = sld [smem:[#allocation32_spill]] }
  0x18   : > { %s5312_s16 = scalar_select %p4472_p3, 1, 0 }
  0x19   : > { %p3870_p5 = pneg %p4472_p3 }
  0x1b   : > { %p4481_p6 = pnand %p3870_p5, %p5284_p1 }
  0x1d   : > { %s5313_s19 = scalar_select %p4481_p6, 1, 0 }
  0x1e   : > { %s4032_s24 = scalar_lea.hbm %s5314_s3, 2048  ;;  %p4497_p8 = pneg %p4481_p6 }
  0x1f   : > { %p4033_p7 = scmp.ne.s32.totalorder %s5314_s3, %s4032_s24  ;;  %p4039_p11 = scmp.lt.u32.totalorder %s4032_s24, %s5314_s3 }
  0x20   : > { %s5315_s27 = scalar_select %p4497_p8, 1, 0 }
  0x21   : > { %p4035_p9 = pnand %p4497_p8, %p4033_p7 }
  0x23   : > { %p4036_p10 = pneg %p4035_p9 }
  0x25   : > { %p4041_p12 = pnand %p4039_p11, %p4036_p10 }
  0x27   : > { %4044 = shalt.err (!%p4041_p12)
}
  0x28   : > { %s4045_s13 = scalar_lea.vmem %s4470_s14, 2048  ;;  %p4053_p5 = scmp.lt.s32.totalorder %s4470_s14, %s4470_s14 }
  0x29   : > { %p4046_p13 = scmp.ne.s32.totalorder %s4470_s14, %s4045_s13  ;;  %p4054_p4 = scmp.lt.s32.totalorder %s4045_s13, %s4045_s13 }
  0x2b   : > { %p4048_p0 = pnand %p4046_p13, %p4497_p8  ;;  %p4055_p7 = por %p4054_p4, %p4053_p5 }
  0x2d   : > { %p4049_p2 = pneg %p4048_p0 }
  0x2f   : > { %p4056_p9 = pnand %p4055_p7, %p4049_p2 }
  0x31   : > { %4059 = shalt.err (!%p4056_p9)
}
  0x32   : > { %s5278_s17 = smov 64   ;;  %s5280_s20 = smov 4  }
  0x33   : > { %3873 = dma.hbm_to_vmem [thread:$0]  (!%p4481_p6), %s5314_s3, 2048, %s4470_s14, [#allocation9], %s5278_s17, %s5278_s17, %s5280_s20  }
  0x34   : > { %s5316_s5 = sld [smem:[#allocation33_spill]] }
  0x3a   : > { %s4060_s26 = scalar_lea.hbm %s5316_s5, 1024 }
  0x3b   : > { %p4061_p4 = scmp.ne.s32.totalorder %s5316_s5, %s4060_s26  ;;  %p4067_p12 = scmp.lt.u32.totalorder %s4060_s26, %s5316_s5 }
  0x3d   : > { %p4063_p10 = pnand %p4061_p4, %p4497_p8 }
  0x3f   : > { %p4064_p11 = pneg %p4063_p10 }
  0x41   : > { %p4069_p13 = pnand %p4067_p12, %p4064_p11 }
  0x43   : > { %4072 = shalt.err (!%p4069_p13)
}
  0x44   : > { %s4073_s14 = scalar_lea.vmem %s4485_s18, 1024  ;;  %p4081_p7 = scmp.lt.s32.totalorder %s4485_s18, %s4485_s18 }
  0x45   : > { %p4074_p0 = scmp.ne.s32.totalorder %s4485_s18, %s4073_s14  ;;  %p4082_p9 = scmp.lt.s32.totalorder %s4073_s14, %s4073_s14 }
  0x47   : > { %p4076_p2 = pnand %p4074_p0, %p4497_p8  ;;  %p4083_p4 = por %p4082_p9, %p4081_p7 }
  0x49   : > { %p4077_p5 = pneg %p4076_p2 }
  0x4b   : > { %p4084_p10 = pnand %p4083_p4, %p4077_p5 }
  0x4d   : > { %4087 = shalt.err (!%p4084_p10)
}
  0x4e   : > { %3879 = dma.hbm_to_vmem [thread:$0]  (!%p4481_p6), %s5316_s5, 1024, %s4485_s18, [#allocation12], %s5278_s17, %s5278_s17, %s5280_s20  }
  0x4f   : > { %s5317_s7 = sld [smem:[#allocation34_spill]] }
  0x55   : > { %s4088_s25 = scalar_lea.hbm %s5317_s7, 1024 }
  0x56   : > { %p4089_p11 = scmp.ne.s32.totalorder %s5317_s7, %s4088_s25  ;;  %p4095_p0 = scmp.lt.u32.totalorder %s4088_s25, %s5317_s7 }
  0x58   : > { %p4091_p12 = pnand %p4089_p11, %p4497_p8 }
  0x5a   : > { %p4092_p13 = pneg %p4091_p12 }
  0x5c   : > { %p4097_p2 = pnand %p4095_p0, %p4092_p13 }
  0x5e   : > { %4100 = shalt.err (!%p4097_p2)
}
  0x5f   : > { %s4101_s18 = scalar_lea.vmem %s4487_s21, 1024  ;;  %p4109_p4 = scmp.lt.s32.totalorder %s4487_s21, %s4487_s21 }
  0x60   : > { %p4102_p5 = scmp.ne.s32.totalorder %s4487_s21, %s4101_s18  ;;  %p4110_p10 = scmp.lt.s32.totalorder %s4101_s18, %s4101_s18 }
  0x62   : > { %p4104_p7 = pnand %p4102_p5, %p4497_p8  ;;  %p4111_p11 = por %p4110_p10, %p4109_p4 }
  0x64   : > { %p4105_p9 = pneg %p4104_p7 }
  0x66   : > { %p4112_p12 = pnand %p4111_p11, %p4105_p9 }
  0x68   : > { %4115 = shalt.err (!%p4112_p12)
}
  0x69   : > { %3885 = dma.hbm_to_vmem [thread:$0]  (!%p4481_p6), %s5317_s7, 1024, %s4487_s21, [#allocation15], %s5278_s17, %s5278_s17, %s5280_s20  }
  0x6a   : > { %s3214_s22 = sadd.s32 4294967294, %s4372_s12   ;;  %s4575_s23 = sadd.s32 1, %s4372_s12  }
  0x6b   : > { %5318 = sst [smem:[#allocation27_spill]] %s4575_s23  ;;  %s38_s24 = sadd.s32 1, %s4368_s11 }
  0x6c   : > { %s35_s25 = ssub.s32 %s4372_s12, %s4575_s23  ;;  %p45_p13 = scmp.ne.s32.totalorder %s4368_s11, %s4364_s10 }
  0x6d   : > { %p36_p0 = scmp.eq.s32.totalorder %s35_s25, 0  ;;  %p46_p2 = scmp.eq.s32.totalorder %s4372_s12, 0 }
  0x6e   : > { %p51_p5 = scmp.ne.s32.totalorder %s4364_s10, %s4360_s30  ;;  %p253_p7 = scmp.eq.s32.totalorder %s4465_s15, 1 }
  0x6f   : > { %s4587_s26 = scalar_select %p36_p0, %s4368_s11, %s38_s24  }
  0x70   : > { %p47_p9 = por %p46_p2, %p45_p13  ;;  %p4591_p4 = por %p5284_p1, %p51_p5 }
  0x71   : > { %5319 = sst [smem:[#allocation28_spill]] %s4587_s26  ;;  %p4595_p10 = por %p253_p7, %p45_p13 }
  0x72   : > { %s5320_s21 = scalar_select %p4591_p4, 1, 0 }
  0x73   : > { %s5321_s28 = scalar_select %p4595_p10, 1, 0 }
  0x74   : > { %p259_p11 = scmp.eq.s32.totalorder %s3214_s22, 1  ;;  %p3909_p12 = scmp.lt.s32.totalorder %s4372_s12, 2 }
  0x75   : > { %5322 = sst [smem:[#allocation29_spill]] %s5321_s28  ;;  %s4601_s29 = sand.u32 1, %s4368_s11  }
  0x76   : > { %p4603_p3 = por %p259_p11, %p51_p5  ;;  %s5282_s18 = sshll.u32 %s4601_s29, 7 }
  0x77   : > { %s5283_s14 = sshll.u32 %s4372_s12, 11  ;;  %p4609_p0 = pnand %p3909_p12, %p47_p9 }
  0x78   : > { %s5323_s13 = scalar_select %p4603_p3, 1, 0 }
  0x79   : > { %s5325_s9 = scalar_select %p4609_p0, 1, 0 }
  0x7a   : > { %5324 = sst [smem:[#allocation30_spill]] %s5323_s13  ;;  %s375_s24 = sand.u32 1, %s4372_s12  }
  0x7b   : > { %s5326_s1 = sld [smem:[#allocation31_spill]]  ;;  %s379_s20 = scalar_lea.vmem [#allocation5], %s5282_s18 }
  0x7c   : > { %s387_s3 = sshll.u32 %s379_s20, 4  ;;  %s4625_s5 = scalar_lea.sflag [#allocation6], %s375_s24  ;;  %s4623_s3 = int_to_ptr.vmem [resolvable:$true] %s387_s3 }
  0x7d   : > { %p4631_p2 = pneg %p4609_p0 }
  0x7f   : > { %s5327_s26 = scalar_select %p4631_p2, 1, 0 }
  0x81   : > { %s4619_s17 = scalar_lea.hbm %s5326_s1, %s5283_s14  ;;  %s4121_s18 = scalar_lea.hbm %s5326_s1, 4096 }
  0x82   : > { %s4116_s7 = scalar_lea.hbm %s4619_s17, 2048  ;;  %p4122_p9 = scmp.lt.u32.totalorder %s4619_s17, %s5326_s1 }
  0x83   : > { %p4117_p13 = scmp.ne.s32.totalorder %s4619_s17, %s4116_s7  ;;  %p4123_p11 = scmp.lt.u32.totalorder %s4121_s18, %s4116_s7 }
  0x84   : > { %p4125_p1 = scmp.lt.u32.totalorder %s4116_s7, %s4619_s17 }
  0x85   : > { %p4119_p5 = pnand %p4631_p2, %p4117_p13  ;;  %p4124_p12 = por %p4123_p11, %p4122_p9 }
  0x87   : > { %p4120_p7 = pneg %p4119_p5  ;;  %p4126_p3 = por %p4125_p1, %p4124_p12 }
  0x89   : > { %p4127_p10 = pnand %p4126_p3, %p4120_p7 }
  0x8b   : > { %4130 = shalt.err (!%p4127_p10)
}
  0x8c   : > { %s4131_s24 = scalar_lea.vmem %s4623_s3, 2048  ;;  %s4379_s25 = smov [#allocation5]  }
  0x8d   : > { %p4132_p13 = scmp.ne.s32.totalorder %s4623_s3, %s4131_s24  ;;  %s4136_s22 = sshll.u32 %s4379_s25, 4  ;;  %s4137_s22 = int_to_ptr.vmem [resolvable:$false] %s4136_s22 }
  0x8e   : > { %s4138_s14 = scalar_lea.vmem %s4137_s22, 4096  ;;  %p4139_p6 = scmp.lt.s32.totalorder %s4623_s3, %s4137_s22 }
  0x8f   : > { %p4134_p5 = pnand %p4132_p13, %p4631_p2  ;;  %p4140_p8 = scmp.lt.s32.totalorder %s4138_s14, %s4131_s24 }
  0x91   : > { %p4135_p4 = pneg %p4134_p5  ;;  %p4141_p9 = por %p4140_p8, %p4139_p6 }
  0x93   : > { %p4142_p11 = pnand %p4141_p9, %p4135_p4 }
  0x95   : > { %4145 = shalt.err (!%p4142_p11)
}
  0x96   : > { %s5328_s7 = smov 4   ;;  %s5329_s18 = smov 64  }
  0x97   : > { %3895 = dma.hbm_to_vmem [thread:$0]  (!%p4609_p0), %s4619_s17, 2048, %s4623_s3, %s4625_s5, %s5329_s18, %s5329_s18, %s5328_s7  }
  0x98   : > { %s4380_s20 = smov [#allocation10]   ;;  %s4146_s24 = scalar_lea.hbm %s5270_s4, 32 }
  0x99   : > { %s291_s1 = sshll.u32 %s4380_s20, 4  ;;  %p4147_p1 = scmp.ne.s32.totalorder %s5270_s4, %s4146_s24  ;;  %s292_s1 = int_to_ptr.vmem [resolvable:$true] %s291_s1 }
  0x9a   : > { %p5330_p3 = scmp.ne.s32.totalorder %s5315_s27, 0  ;;  %p4153_p4 = scmp.lt.u32.totalorder %s4146_s24, %s5270_s4 }
  0x9c   : > { %p4149_p6 = pnand %p4147_p1, %p5330_p3 }
  0x9e   : > { %p4150_p8 = pneg %p4149_p6 }
  0xa0   : > { %p4155_p10 = pnand %p4153_p4, %p4150_p8 }
  0xa2   : > { %4158 = shalt.err (!%p4155_p10)
}
  0xa3   : > { %s4159_s3 = scalar_lea.vmem %s292_s1, 32  ;;  %p4167_p5 = scmp.lt.s32.totalorder %s292_s1, %s292_s1 }
  0xa4   : > { %p4160_p7 = scmp.ne.s32.totalorder %s292_s1, %s4159_s3  ;;  %p4168_p9 = scmp.lt.s32.totalorder %s4159_s3, %s4159_s3 }
  0xa6   : > { %p4162_p12 = pnand %p4160_p7, %p5330_p3  ;;  %p4169_p11 = por %p4168_p9, %p4167_p5 }
  0xa8   : > { %p4163_p13 = pneg %p4162_p12 }
  0xaa   : > { %p4170_p0 = pnand %p4169_p11, %p4163_p13 }
  0xac   : > { %4173 = shalt.err (!%p4170_p0)
}
  0xad   : > { %s4381_s11 = smov 16   ;;  %s4382_s17 = smov 1  }
  0xae   : > { %p5331_p1 = scmp.ne.s32.totalorder %s5313_s19, 0  ;;  %s4383_s20 = smov [#allocation13]  }
  0xaf   : > { %s318_s25 = sshll.u32 %s4383_s20, 4  ;;  %s4384_s24 = smov [#allocation16]   ;;  %s319_s25 = int_to_ptr.vmem [resolvable:$true] %s318_s25 }
  0xb0   : > { %3876 = dma.hbm_to_vmem [thread:$0]  (!%p5331_p1), %s5270_s4, 32, %s292_s1, [#allocation9], %s4381_s11, %s4381_s11, %s4382_s17  }
  0xb1   : > { %s342_s22 = sshll.u32 %s4384_s24, 4  ;;  %s4174_s30 = scalar_lea.hbm %s5272_s6, 16  ;;  %s4676_s22 = int_to_ptr.vmem [resolvable:$true] %s342_s22 }
  0xb2   : > { %p4175_p0 = scmp.ne.s32.totalorder %s5272_s6, %s4174_s30  ;;  %p4181_p4 = scmp.lt.u32.totalorder %s4174_s30, %s5272_s6 }
  0xb4   : > { %p4177_p6 = pnand %p4175_p0, %p5330_p3 }
  0xb6   : > { %p4178_p8 = pneg %p4177_p6 }
  0xb8   : > { %p4183_p10 = pnand %p4181_p4, %p4178_p8 }
  0xba   : > { %4186 = shalt.err (!%p4183_p10)
}
  0xbb   : > { %s4187_s11 = scalar_lea.vmem %s319_s25, 16  ;;  %s4194_s17 = scalar_lea.vmem %s319_s25, 32 }
  0xbc   : > { %p4188_p7 = scmp.ne.s32.totalorder %s319_s25, %s4187_s11  ;;  %p4195_p5 = scmp.lt.s32.totalorder %s319_s25, %s319_s25 }
  0xbd   : > { %p4196_p9 = scmp.lt.s32.totalorder %s4194_s17, %s4187_s11 }
  0xbe   : > { %p4190_p12 = pnand %p4188_p7, %p5330_p3 }
  0xbf   : > { %p4197_p11 = por %p4196_p9, %p4195_p5 }
  0xc0   : > { %p4191_p13 = pneg %p4190_p12 }
  0xc2   : > { %p4198_p2 = pnand %p4197_p11, %p4191_p13 }
  0xc4   : > { %4201 = shalt.err (!%p4198_p2)
}
  0xc5   : > { %3882 = dma.hbm_to_vmem [thread:$0]  (!%p5331_p1), %s5272_s6, 16, %s319_s25, [#allocation12]  }
  0xc6   : > { %s4202_s20 = scalar_lea.hbm %s5274_s8, 16 }
  0xc7   : > { %p4203_p0 = scmp.ne.s32.totalorder %s5274_s8, %s4202_s20  ;;  %p4209_p2 = scmp.lt.u32.totalorder %s4202_s20, %s5274_s8 }
  0xc9   : > { %p4205_p6 = pnand %p4203_p0, %p5330_p3 }
  0xcb   : > { %p4206_p8 = pneg %p4205_p6 }
  0xcd   : > { %p4211_p4 = pnand %p4209_p2, %p4206_p8 }
  0xcf   : > { %4214 = shalt.err (!%p4211_p4)
}
  0xd0   : > { %s4215_s25 = scalar_lea.vmem %s4676_s22, 16  ;;  %s4222_s1 = scalar_lea.vmem %s4676_s22, 32 }
  0xd1   : > { %p4216_p10 = scmp.ne.s32.totalorder %s4676_s22, %s4215_s25  ;;  %p4223_p13 = scmp.lt.s32.totalorder %s4676_s22, %s4676_s22 }
  0xd2   : > { %p4224_p5 = scmp.lt.s32.totalorder %s4222_s1, %s4215_s25 }
  0xd3   : > { %p4218_p7 = pnand %p4216_p10, %p5330_p3 }
  0xd4   : > { %p4225_p9 = por %p4224_p5, %p4223_p13 }
  0xd5   : > { %p4219_p12 = pneg %p4218_p7 }
  0xd7   : > { %p4226_p11 = pnand %p4225_p9, %p4219_p12 }
  0xd9   : > { %4229 = shalt.err (!%p4226_p11)
}
  0xda   : > { %3888 = dma.hbm_to_vmem [thread:$0]  (!%p5331_p1), %s5274_s8, 16, %s4676_s22, [#allocation15]  }
  0xdb   : > { %s5332_s27 = sshll.u32 %s4372_s12, 11  ;;  %s5333_s13 = sshll.u32 %s4601_s29, 7 }
  0xdc   : > { %s4725_s30 = scalar_lea.hbm %s5266_s0, %s5332_s27  ;;  %s357_s19 = scalar_lea.vmem [#allocation2], %s5333_s13 }
  0xdd   : > { %s365_s20 = sshll.u32 %s357_s19, 4  ;;  %s3231_s24 = sshll.u32 %s4601_s29, 4  ;;  %s4729_s20 = int_to_ptr.vmem [resolvable:$true] %s365_s20 }
  0xde   : > { %s354_s14 = scalar_lea.sflag [#allocation3], %s4601_s29  ;;  %s4230_s3 = scalar_lea.hbm %s4725_s30, 2048 }
  0xdf   : > { %p4231_p3 = scmp.ne.s32.totalorder %s4725_s30, %s4230_s3  ;;  %p5334_p1 = scmp.ne.s32.totalorder %s5327_s26, 0 }
  0xe0   : > { %s4235_s25 = scalar_lea.hbm %s5266_s0, 4096  ;;  %p4236_p8 = scmp.lt.u32.totalorder %s4725_s30, %s5266_s0 }
  0xe1   : > { %p4233_p0 = pnand %p4231_p3, %p5334_p1  ;;  %p4237_p2 = scmp.lt.u32.totalorder %s4235_s25, %s4230_s3 }
  0xe2   : > { %p4239_p10 = scmp.lt.u32.totalorder %s4230_s3, %s4725_s30 }
  0xe3   : > { %p4234_p6 = pneg %p4233_p0  ;;  %p4238_p4 = por %p4237_p2, %p4236_p8 }
  0xe5   : > { %p4240_p7 = por %p4239_p10, %p4238_p4 }
  0xe7   : > { %p4241_p12 = pnand %p4240_p7, %p4234_p6 }
  0xe9   : > { %4244 = shalt.err (!%p4241_p12)
}
  0xea   : > { %s4245_s17 = scalar_lea.vmem %s4729_s20, 2048  ;;  %s4385_s27 = smov [#allocation2]  }
  0xeb   : > { %p4246_p13 = scmp.ne.s32.totalorder %s4729_s20, %s4245_s17  ;;  %s4250_s15 = sshll.u32 %s4385_s27, 4  ;;  %s4251_s15 = int_to_ptr.vmem [resolvable:$false] %s4250_s15 }
  0xec   : > { %s4252_s28 = scalar_lea.vmem %s4251_s15, 4096  ;;  %p4253_p11 = scmp.lt.s32.totalorder %s4729_s20, %s4251_s15 }
  0xed   : > { %p4248_p5 = pnand %p4246_p13, %p5334_p1  ;;  %p4254_p3 = scmp.lt.s32.totalorder %s4252_s28, %s4245_s17 }
  0xef   : > { %p4249_p9 = pneg %p4248_p5  ;;  %p4255_p0 = por %p4254_p3, %p4253_p11 }
  0xf1   : > { %p4256_p8 = pnand %p4255_p0, %p4249_p9 }
  0xf3   : > { %4259 = shalt.err (!%p4256_p8)
}
  0xf4   : > { %p5335_p6 = scmp.ne.s32.totalorder %s5325_s9, 0  ;;  %s3356_s13 = sshll.u32 %s4372_s12, 8 }
  0xf5   : > { %s4763_s22 = scalar_lea.hbm %s5268_s2, %s3356_s13  ;;  %s401_s23 = scalar_lea.vmem [#allocation7], %s3231_s24 }
  0xf6   : > { %3892 = dma.hbm_to_vmem [thread:$0]  (!%p5335_p6), %s4725_s30, 2048, %s4729_s20, %s354_s14, %s5329_s18, %s5329_s18, %s5328_s7  }
  0xf7   : > { %s408_s25 = sshll.u32 %s401_s23, 4  ;;  %s4260_s1 = scalar_lea.hbm %s4763_s22, 256  ;;  %s4767_s25 = int_to_ptr.vmem [resolvable:$true] %s408_s25 }
  0xf8   : > { %p4261_p2 = scmp.ne.s32.totalorder %s4763_s22, %s4260_s1  ;;  %s4265_s30 = scalar_lea.hbm %s5268_s2, 512 }
  0xf9   : > { %p4266_p7 = scmp.lt.u32.totalorder %s4763_s22, %s5268_s2  ;;  %p4267_p12 = scmp.lt.u32.totalorder %s4265_s30, %s4260_s1 }
  0xfa   : > { %p4263_p4 = pnand %p4261_p2, %p5334_p1  ;;  %p4269_p5 = scmp.lt.u32.totalorder %s4260_s1, %s4763_s22 }
  0xfb   : > { %p4268_p13 = por %p4267_p12, %p4266_p7 }
  0xfc   : > { %p4264_p10 = pneg %p4263_p4 }
  0xfd   : > { %p4270_p9 = por %p4269_p5, %p4268_p13 }
  0xff   : > { %p4271_p11 = pnand %p4270_p9, %p4264_p10 }
 0x101   : > { %4274 = shalt.err (!%p4271_p11)
}
 0x102   : > { %s4275_s29 = scalar_lea.vmem %s4767_s25, 256  ;;  %s4386_s24 = smov [#allocation7]  }
 0x103   : > { %p4276_p3 = scmp.ne.s32.totalorder %s4767_s25, %s4275_s29  ;;  %s4280_s11 = sshll.u32 %s4386_s24, 4  ;;  %s4281_s11 = int_to_ptr.vmem [resolvable:$false] %s4280_s11 }
 0x104   : > { %s4282_s17 = scalar_lea.vmem %s4281_s11, 512  ;;  %p4283_p2 = scmp.lt.s32.totalorder %s4767_s25, %s4281_s11 }
 0x105   : > { %p4278_p0 = pnand %p4276_p3, %p5334_p1  ;;  %p4284_p4 = scmp.lt.s32.totalorder %s4282_s17, %s4275_s29 }
 0x107   : > { %p4279_p8 = pneg %p4278_p0  ;;  %p4285_p7 = por %p4284_p4, %p4283_p2 }
 0x109   : > { %p4286_p12 = pnand %p4285_p7, %p4279_p8 }
 0x10b   : > { %4289 = shalt.err (!%p4286_p12)
}
 0x10c   : > { %s4387_s27 = smov 128   ;;  %s4388_s15 = smov 8  }
 0x10d   : > { %3898 = dma.hbm_to_vmem [thread:$0]  (!%p5335_p6), %s4763_s22, 256, %s4767_s25, %s4625_s5, %s4387_s27, %s4387_s27, %s4388_s15  }
 0x10e   : > { %p5336_p1 = scmp.ne.s32.totalorder %s5312_s16, 0 }
 0x10f   : > { %s4794_s26 = sand.u32 (!%p5336_p1), 1, %s4364_s10   ;;  %p5337_p10 = scmp.ne.s32.totalorder (!%p5336_p1), %s5320_s21, 0 }
 0x110   : > { %420 = sbr.rel (%p5336_p1) target bundleno = 1991 (0x7c7), region = 56  ;;  %s3235_s28 = sshll.u32 (!%p5336_p1), %s4794_s26, 7 }
 0x111   : > { %s423_s13 = scalar_lea.sflag (!%p5336_p1), [#allocation3], %s4794_s26  ;;  %s4798_s19 = scalar_lea.vmem (!%p5336_p1), [#allocation2], %s3235_s28 }
 0x117   : > { %4335 = dma.done.wait (%p5337_p10), %s423_s13, 2048  }
 0x118   : > { %4337 = vsyncadd (%p5337_p10), %s423_s13, 4294965248  ;;  %s5338_s9 = sld [smem:[#allocation26_spill]]  ;;  %s4805_s3 = scalar_lea.vmem [#allocation5], %s3235_s28 }
 0x11e   : > { %s431_s5 = sand.u32 1, %s5338_s9  }
 0x11f   : > { %s432_s16 = scalar_lea.sflag [#allocation6], %s431_s5 }
 0x120   : > { %4339 = dma.done.wait (%p5337_p10), %s432_s16, 2304  }
 0x121   : > { %4341 = vsyncadd (%p5337_p10), %s432_s16, 4294964992  ;;  %s3237_s22 = sshll.u32 %s4794_s26, 4  ;;  %p5339_p6 = scmp.eq.s32.totalorder %s5338_s9, 0 }
 0x122   : > { %s4814_s23 = scalar_lea.vmem [#allocation7], %s3237_s22 }
 0x123   : > { %4343 = dma.done.wait (%p5339_p6), [#allocation9], 2080   ;;  %p5340_p13 = pmov %p5339_p6 }
 0x124   : > { %p5341_p5 = pmov %p5339_p6 }
 0x125   : > { %4345 = vsyncadd (%p5340_p13), [#allocation9], 4294965216 }
 0x126   : > { %4347 = dma.done.wait (%p5341_p5), [#allocation12], 1040   ;;  %p5342_p9 = pmov %p5341_p5 }
 0x127   : > { %p5343_p11 = pmov %p5341_p5 }
 0x128   : > { %4349 = vsyncadd (%p5342_p9), [#allocation12], 4294966256 }
 0x129   : > { %4351 = dma.done.wait (%p5343_p11), [#allocation15], 1040   ;;  %p5344_p3 = pmov %p5341_p5 }
 0x12a   : > { %v3965_v0 = vld [vmem:[#allocation8] sm:$0xff]   ;;  %v3966_v1 = vld [vmem:[#allocation8 + $0x8] sm:$0xff]   ;;  %v3967_v2 = vld [vmem:[#allocation8 + $0x10] sm:$0xff]   ;;  %v4389_v24 = vmov 0.0   ;;  %vm4390_vm0 = vmmov 0   ;;  %vm923_vm1 = vcmask 130048  }
 0x12b   : > { %4353 = vsyncadd (%p5344_p3), [#allocation15], 4294966256  ;;  %3510 = vmatprep.subr.bf16.mxu0 %v3965_v0  ;;  %v3968_v3 = vld [vmem:[#allocation8 + $0x18] sm:$0xff]   ;;  %v3973_v4 = vld [vmem:[%s4805_s3] sm:$0xff]   ;;  %3570 = vmatprep.subr.bf16.mxu1 %v4389_v24  ;;  %s512_s21 = scalar_lea.vmem [#allocation17], %s3237_s22  ;;  %s5345_s25 = sld [smem:[#allocation29_spill]] }
 0x12c   : > { %3511 = vmatpush3.bf16.msra.mxu0 %v3965_v0  ;;  %3526 = vmatprep.mubr.bf16.mxu0 %v3973_v4  ;;  %v3969_v5 = vld [vmem:[#allocation8 + $0x20] sm:$0xff]   ;;  %v3970_v6 = vld [vmem:[#allocation8 + $0x28] sm:$0xff]   ;;  %v3971_v7 = vld [vmem:[#allocation8 + $0x30] sm:$0xff]   ;;  %s3041_s1 = sshll.u32 %s512_s21, 4  ;;  %s3357_s7 = sshll.u32 %s5338_s9, 8  ;;  %s5217_s1 = int_to_ptr.vmem [resolvable:$true] %s3041_s1 }
 0x12d   : > { %3512 = vmatprep.subr.bf16.mxu0 %v3966_v1  ;;  %v3972_v8 = vld [vmem:[#allocation8 + $0x38] sm:$0xff]   ;;  %v3974_v9 = vld [vmem:[%s4805_s3 + $0x8] sm:$0xff]   ;;  %v3975_v10 = vld [vmem:[%s4805_s3 + $0x10] sm:$0xff]   ;;  %3572 = vmatprep.mubr.msk.bf16.mxu1 %vm4390_vm0, %v4389_v24  ;;  %s5346_s20 = sld [smem:[#allocation35_spill]]  ;;  %s3028_s29 = scalar_lea.sflag [#allocation4], %s4794_s26 }
 0x12e   : > { %v3976_v11 = vld [vmem:[%s4805_s3 + $0x18] sm:$0xff]   ;;  %v3977_v12 = vld [vmem:[%s4805_s3 + $0x20] sm:$0xff]   ;;  %v3978_v13 = vld [vmem:[%s4805_s3 + $0x28] sm:$0xff]   ;;  %s4290_s24 = scalar_lea.vmem %s5217_s1, 256  ;;  %s4391_s11 = smov [#allocation17]  }
 0x12f   : > { %v3979_v14 = vld [vmem:[%s4805_s3 + $0x30] sm:$0xff]   ;;  %v3980_v15 = vld [vmem:[%s4805_s3 + $0x38] sm:$0xff]   ;;  %v3981_v16 = vld [vmem:[%s4805_s3 + $0x40] sm:$0xff]   ;;  %p4291_p0 = scmp.ne.s32.totalorder %s5217_s1, %s4290_s24  ;;  %s4294_s17 = sshll.u32 %s4391_s11, 4  ;;  %s4295_s17 = int_to_ptr.vmem [resolvable:$false] %s4294_s17 }
 0x130   : > { %3513 = vmatpush3.bf16.msra.mxu0 %v3966_v1  ;;  %v3982_v17 = vld [vmem:[%s4805_s3 + $0x48] sm:$0xff]   ;;  %v3983_v18 = vld [vmem:[%s4805_s3 + $0x50] sm:$0xff]   ;;  %v3984_v19 = vld [vmem:[%s4805_s3 + $0x58] sm:$0xff]   ;;  %s4296_s27 = scalar_lea.vmem %s4295_s17, 512  ;;  %p4297_p7 = scmp.lt.s32.totalorder %s5217_s1, %s4295_s17 }
 0x131   : > { %3514 = vmatprep.subr.bf16.mxu0 %v3967_v2  ;;  %v3985_v20 = vld [vmem:[%s4805_s3 + $0x60] sm:$0xff]   ;;  %v3986_v21 = vld [vmem:[%s4805_s3 + $0x68] sm:$0xff]   ;;  %v3987_v22 = vld [vmem:[%s4805_s3 + $0x70] sm:$0xff]   ;;  %p5347_p8 = scmp.ne.s32.totalorder %s5345_s25, 0  ;;  %p4298_p12 = scmp.lt.s32.totalorder %s4296_s27, %s4290_s24 }
 0x132   : > { %v3988_v23 = vld [vmem:[%s4805_s3 + $0x78] sm:$0xff]   ;;  %v4851_v31 = vld [vmem:[%s4798_s19] sm:$0xff]   ;;  %v4860_v38 = vld [vmem:[%s4798_s19 + $0x8] sm:$0xff]  }
 0x133   : > { %v4863_v39 = vld [vmem:[%s4798_s19 + $0x10] sm:$0xff]   ;;  %v4876_v46 = vld [vmem:[%s4798_s19 + $0x18] sm:$0xff]   ;;  %v4884_v53 = vld [vmem:[%s4798_s19 + $0x20] sm:$0xff]   ;;  %s5222_s14 = scalar_lea.hbm %s5346_s20, %s3357_s7  ;;  %p4292_p2 = pnand %p4291_p0, %p5347_p8 }
 0x134   : > { %3515 = vmatpush3.bf16.msra.mxu0 %v3967_v2  ;;  %v4892_v60 = vld [vmem:[%s4798_s19 + $0x28] sm:$0xff]   ;;  %p4299_p1 = por %p4298_p12, %p4297_p7 }
 0x135   : > { %3516 = vmatprep.subr.bf16.mxu0 %v3968_v3  ;;  %p4293_p4 = pneg %p4292_p2 }
 0x137   : > { %p4300_p10 = pnand %p4299_p1, %p4293_p4 }
 0x138   : > { %3517 = vmatpush3.bf16.msra.mxu0 %v3968_v3  ;;  %v4903_v3 = vld [vmem:[%s4798_s19 + $0x30] sm:$0xff]  }
 0x139   : > { %3518 = vmatprep.subr.bf16.mxu0 %v3969_v5 }
 0x13c   : > { %3519 = vmatpush3.bf16.msra.mxu0 %v3969_v5 }
 0x13d   : > { %3520 = vmatprep.subr.bf16.mxu0 %v3970_v6 }
 0x140   : > { %3521 = vmatpush3.bf16.msra.mxu0 %v3970_v6 }
 0x141   : > { %3522 = vmatprep.subr.bf16.mxu0 %v3971_v7 }
 0x144   : > { %3523 = vmatpush3.bf16.msra.mxu0 %v3971_v7 }
 0x145   : > { %3524 = vmatprep.subr.bf16.mxu0 %v3972_v8 }
 0x148   : > { %3525 = vmatpush3.bf16.msra.mxu0 %v3972_v8 }
 0x149   : > { %3558 = vmatprep.subr.bf16.mxu0 %v4389_v24 }
 0x14b   : > { %3527 = vmatmul.mubr.bf16.vlgmr.msra.gmra.mrb[0].mxu0 %v3974_v9 }
 0x14c   : > { %3530 = vmatprep.mubr.bf16.mxu0 %v3975_v10  ;;  %v4911_v10 = vld [vmem:[%s4798_s19 + $0x38] sm:$0xff]  }
 0x153   : > { %3531 = vmatmul.mubr.bf16.gmra.mrb[4].mxu0 %v3976_v11  ;;  %v4914_v11 = vld [vmem:[%s4798_s19 + $0x60] sm:$0xff]  }
 0x154   : > { %3534 = vmatprep.mubr.bf16.mxu0 %v3977_v12 }
 0x15b   : > { %3535 = vmatmul.mubr.bf16.gmra.mrb[8].mxu0 %v3978_v13 }
 0x15c   : > { %3538 = vmatprep.mubr.bf16.mxu0 %v3979_v14 }
 0x163   : > { %3539 = vmatmul.mubr.bf16.gmra.mrb[12].mxu0 %v3980_v15 }
 0x164   : > { %3542 = vmatprep.mubr.bf16.mxu0 %v3981_v16 }
 0x16b   : > { %3543 = vmatmul.mubr.bf16.gmra.mrb[16].mxu0 %v3982_v17  ;;  %v4005_v17 = vld [vmem:[#allocation8 + $0x40] sm:$0xff]  }
 0x16c   : > { %3546 = vmatprep.mubr.bf16.mxu0 %v3983_v18 }
 0x173   : > { %3547 = vmatmul.mubr.bf16.gmra.mrb[20].mxu0 %v3984_v19  ;;  %v4927_v19 = vld [vmem:[%s4798_s19 + $0x40] sm:$0xff]  }
 0x174   : > { %3550 = vmatprep.mubr.bf16.mxu0 %v3985_v20  ;;  %v4930_v20 = vld [vmem:[%s4798_s19 + $0x70] sm:$0xff]  }
 0x17b   : > { %3551 = vmatmul.mubr.bf16.gmra.mrb[24].mxu0 %v3986_v21  ;;  %v4006_v21 = vld [vmem:[#allocation8 + $0x48] sm:$0xff]  }
 0x17c   : > { %3554 = vmatprep.mubr.bf16.mxu0 %v3987_v22  ;;  %v4007_v22 = vld [vmem:[#allocation8 + $0x50] sm:$0xff]  }
 0x183   : > { %3555 = vmatmul.mubr.bf16.gmra.mrb[28].mxu0 %v3988_v23  ;;  %v4940_v23 = vld [vmem:[%s4798_s19 + $0x48] sm:$0xff]  }
 0x184   : > { %3560 = vmatprep.mubr.msk.bf16.mxu0 %vm4390_vm0, %v4389_v24 }
 0x21e   : > { %v3528_v25 = vpop.f32.mrb[0].mxu0 }
 0x21f   : > { %v775_v26 = vpop.f32.mrb[1].mxu0 }
 0x220   : > { %v3529_v27 = vpop.f32.mrb[2].mxu0 }
 0x221   : > { %v903_v28 = vpack.c.bf16 %v3529_v27, %v3528_v25  ;;  %v778_v29 = vpop.f32.mrb[3].mxu0  ;;  %v4008_v25 = vld [vmem:[#allocation8 + $0x58] sm:$0xff]   ;;  %v4948_v27 = vld [vmem:[%s4798_s19 + $0x50] sm:$0xff]  }
 0x222   : > { %v902_v30 = vpack.c.bf16 %v778_v29, %v775_v26  ;;  %v4009_v26 = vld [vmem:[#allocation8 + $0x60] sm:$0xff]   ;;  %v4964_v29 = vld [vmem:[%s4798_s19 + $0x68] sm:$0xff]  }
 0x224   : > { %3559 = vmatpush3.bf16.msra.mxu0 %v902_v30  ;;  %v4010_v30 = vld [vmem:[#allocation8 + $0x68] sm:$0xff]  }
 0x225   : > { %3564 = vmatprep.subr.bf16.mxu0 %v4389_v24 }
 0x226   : > { %v3532_v32 = vpop.f32.mrb[4].mxu0 }
 0x227   : > { %3561 = vmatmul.mubr.msk.bf16.vlgmr.msra.gmra.mrb[32].mxu0 %vm923_vm1, %v4851_v31  ;;  %v791_v33 = vpop.f32.mrb[5].mxu0 }
 0x228   : > { %3565 = vmatpush3.bf16.msra.mxu0 %v903_v28  ;;  %v3533_v34 = vpop.f32.mrb[6].mxu0  ;;  %3566 = vmatprep.mubr.msk.bf16.mxu0 %vm4390_vm0, %v4389_v24  ;;  %v4956_v28 = vld [vmem:[%s4798_s19 + $0x58] sm:$0xff]  }
 0x229   : > { %v905_v35 = vpack.c.bf16 %v3533_v34, %v3532_v32  ;;  %v794_v36 = vpop.f32.mrb[7].mxu0  ;;  %3630 = vmatprep.subr.bf16.mxu0 %v4389_v24  ;;  %v4011_v32 = vld [vmem:[#allocation8 + $0x70] sm:$0xff]   ;;  %v4012_v34 = vld [vmem:[#allocation8 + $0x78] sm:$0xff]  }
 0x22a   : > { %v904_v37 = vpack.c.bf16 %v794_v36, %v791_v33  ;;  %v4972_v33 = vld [vmem:[%s4798_s19 + $0x78] sm:$0xff]  }
 0x22c   : > { %3571 = vmatpush3.bf16.msra.mxu1 %v904_v37 }
 0x22d   : > { %3576 = vmatprep.subr.bf16.mxu1 %v4389_v24 }
 0x22e   : > { %v3536_v40 = vpop.f32.mrb[8].mxu0 }
 0x22f   : > { %3567 = vmatmul.mubr.msk.bf16.vlgmr.msra.gmra.mrb[36].mxu0 %vm923_vm1, %v4860_v38  ;;  %3573 = vmatmul.mubr.msk.bf16.vlgmr.msra.gmra.mrb[0].mxu1 %vm923_vm1, %v4863_v39  ;;  %v807_v41 = vpop.f32.mrb[9].mxu0 }
 0x230   : > { %3577 = vmatpush3.bf16.msra.mxu1 %v905_v35  ;;  %3578 = vmatprep.mubr.msk.bf16.mxu1 %vm4390_vm0, %v4389_v24  ;;  %v3537_v42 = vpop.f32.mrb[10].mxu0  ;;  %v4979_v35 = vld [vmem:[#allocation10] ss:$0 sm:$0xff] }
 0x231   : > { %v907_v43 = vpack.c.bf16 %v3537_v42, %v3536_v40  ;;  %v810_v44 = vpop.f32.mrb[11].mxu0  ;;  %3582 = vmatprep.subr.bf16.mxu1 %v4389_v24  ;;  %3632 = vmatprep.mubr.msk.bf16.mxu0 %vm4390_vm0, %v4389_v24 }
 0x232   : > { %v906_v45 = vpack.c.bf16 %v810_v44, %v807_v41 }
 0x236   : > { %v3540_v47 = vpop.f32.mrb[12].mxu0 }
 0x237   : > { %3579 = vmatmul.mubr.msk.bf16.vlgmr.msra.gmra.mrb[4].mxu1 %vm923_vm1, %v4876_v46  ;;  %v823_v48 = vpop.f32.mrb[13].mxu0 }
 0x238   : > { %3583 = vmatpush3.bf16.msra.mxu1 %v906_v45  ;;  %3584 = vmatprep.mubr.msk.bf16.mxu1 %vm4390_vm0, %v4389_v24  ;;  %v3541_v49 = vpop.f32.mrb[14].mxu0 }
 0x239   : > { %3588 = vmatprep.subr.bf16.mxu1 %v4389_v24  ;;  %v909_v50 = vpack.c.bf16 %v3541_v49, %v3540_v47  ;;  %v826_v51 = vpop.f32.mrb[15].mxu0 }
 0x23a   : > { %v908_v52 = vpack.c.bf16 %v826_v51, %v823_v48 }
 0x23e   : > { %v3544_v54 = vpop.f32.mrb[16].mxu0 }
 0x23f   : > { %3585 = vmatmul.mubr.msk.bf16.vlgmr.msra.gmra.mrb[8].mxu1 %vm923_vm1, %v4884_v53  ;;  %v839_v55 = vpop.f32.mrb[17].mxu0 }
 0x240   : > { %3589 = vmatpush3.bf16.msra.mxu1 %v907_v43  ;;  %3590 = vmatprep.mubr.msk.bf16.mxu1 %vm4390_vm0, %v4389_v24  ;;  %v3545_v56 = vpop.f32.mrb[18].mxu0 }
 0x241   : > { %3594 = vmatprep.subr.bf16.mxu1 %v4389_v24  ;;  %v911_v57 = vpack.c.bf16 %v3545_v56, %v3544_v54  ;;  %v842_v58 = vpop.f32.mrb[19].mxu0 }
 0x242   : > { %v910_v59 = vpack.c.bf16 %v842_v58, %v839_v55 }
 0x246   : > { %v4894_v61 = vpop.f32.mrb[20].mxu0 }
 0x247   : > { %3591 = vmatmul.mubr.msk.bf16.vlgmr.msra.gmra.mrb[12].mxu1 %vm923_vm1, %v4892_v60  ;;  %v855_v62 = vpop.f32.mrb[21].mxu0 }
 0x248   : > { %3595 = vmatpush3.bf16.msra.mxu1 %v908_v52  ;;  %3596 = vmatprep.mubr.msk.bf16.mxu1 %vm4390_vm0, %v4389_v24  ;;  %v3549_v63 = vpop.f32.mrb[22].mxu0 }
 0x249   : > { %3600 = vmatprep.subr.bf16.mxu1 %v4389_v24  ;;  %v913_v0 = vpack.c.bf16 %v3549_v63, %v4894_v61  ;;  %v858_v1 = vpop.f32.mrb[23].mxu0 }
 0x24a   : > { %v912_v2 = vpack.c.bf16 %v858_v1, %v855_v62 }
 0x24e   : > { %v3552_v4 = vpop.f32.mrb[24].mxu0 }
 0x24f   : > { %3597 = vmatmul.mubr.msk.bf16.vlgmr.msra.gmra.mrb[16].mxu1 %vm923_vm1, %v4903_v3  ;;  %v871_v5 = vpop.f32.mrb[25].mxu0 }
 0x250   : > { %3601 = vmatpush3.bf16.msra.mxu1 %v909_v50  ;;  %3602 = vmatprep.mubr.msk.bf16.mxu1 %vm4390_vm0, %v4389_v24  ;;  %v3553_v6 = vpop.f32.mrb[26].mxu0 }
 0x251   : > { %3606 = vmatprep.subr.bf16.mxu1 %v4389_v24  ;;  %v915_v7 = vpack.c.bf16 %v3553_v6, %v3552_v4  ;;  %v874_v8 = vpop.f32.mrb[27].mxu0 }
 0x252   : > { %v914_v9 = vpack.c.bf16 %v874_v8, %v871_v5 }
 0x254   : > { %3631 = vmatpush3.bf16.msra.mxu0 %v914_v9 }
 0x255   : > { %3642 = vmatprep.subr.bf16.mxu0 %v4389_v24 }
 0x256   : > { %v3556_v12 = vpop.f32.mrb[28].mxu0 }
 0x257   : > { %3603 = vmatmul.mubr.msk.bf16.vlgmr.msra.gmra.mrb[20].mxu1 %vm923_vm1, %v4911_v10  ;;  %3633 = vmatmul.mubr.msk.bf16.vlgmr.msra.gmra.mrb[40].mxu0 %vm923_vm1, %v4914_v11  ;;  %v887_v13 = vpop.f32.mrb[29].mxu0 }
 0x258   : > { %3607 = vmatpush3.bf16.msra.mxu1 %v910_v59  ;;  %3608 = vmatprep.mubr.msk.bf16.mxu1 %vm4390_vm0, %v4389_v24  ;;  %v3557_v14 = vpop.f32.mrb[30].mxu0 }
 0x259   : > { %3612 = vmatprep.subr.bf16.mxu1 %v4389_v24  ;;  %v917_v15 = vpack.c.bf16 %v3557_v14, %v3556_v12  ;;  %v890_v16 = vpop.f32.mrb[31].mxu0  ;;  %3644 = vmatprep.mubr.msk.bf16.mxu0 %vm4390_vm0, %v4389_v24 }
 0x25a   : > { %v916_v18 = vpack.c.bf16 %v890_v16, %v887_v13 }
 0x25c   : > { %3643 = vmatpush3.bf16.msra.mxu0 %v916_v18 }
 0x25d   : > { %3654 = vmatprep.subr.bf16.mxu0 %v4005_v17 }
 0x25f   : > { %3609 = vmatmul.mubr.msk.bf16.vlgmr.msra.gmra.mrb[24].mxu1 %vm923_vm1, %v4927_v19  ;;  %3645 = vmatmul.mubr.msk.bf16.vlgmr.msra.gmra.mrb[44].mxu0 %vm923_vm1, %v4930_v20 }
 0x260   : > { %3613 = vmatpush3.bf16.msra.mxu1 %v911_v57  ;;  %3614 = vmatprep.mubr.msk.bf16.mxu1 %vm4390_vm0, %v4389_v24 }
 0x261   : > { %3618 = vmatprep.subr.bf16.mxu1 %v4389_v24  ;;  %3655 = vmatpush3.bf16.msra.mxu0 %v4005_v17 }
 0x262   : > { %3656 = vmatprep.subr.bf16.mxu0 %v4006_v21 }
 0x265   : > { %3657 = vmatpush3.bf16.msra.mxu0 %v4006_v21 }
 0x266   : > { %3658 = vmatprep.subr.bf16.mxu0 %v4007_v22 }
 0x267   : > { %3615 = vmatmul.mubr.msk.bf16.vlgmr.msra.gmra.mrb[28].mxu1 %vm923_vm1, %v4940_v23 }
 0x268   : > { %3619 = vmatpush3.bf16.msra.mxu1 %v912_v2  ;;  %3620 = vmatprep.mubr.msk.bf16.mxu1 %vm4390_vm0, %v4389_v24 }
 0x269   : > { %3624 = vmatprep.subr.bf16.mxu1 %v4389_v24  ;;  %3659 = vmatpush3.bf16.msra.mxu0 %v4007_v22 }
 0x26a   : > { %3660 = vmatprep.subr.bf16.mxu0 %v4008_v25 }
 0x26d   : > { %3661 = vmatpush3.bf16.msra.mxu0 %v4008_v25 }
 0x26e   : > { %3662 = vmatprep.subr.bf16.mxu0 %v4009_v26 }
 0x26f   : > { %3621 = vmatmul.mubr.msk.bf16.vlgmr.msra.gmra.mrb[32].mxu1 %vm923_vm1, %v4948_v27 }
 0x270   : > { %3625 = vmatpush3.bf16.msra.mxu1 %v913_v0  ;;  %3626 = vmatprep.mubr.msk.bf16.mxu1 %vm4390_vm0, %v4389_v24 }
 0x271   : > { %3636 = vmatprep.subr.bf16.mxu1 %v4389_v24  ;;  %3663 = vmatpush3.bf16.msra.mxu0 %v4009_v26 }
 0x272   : > { %3664 = vmatprep.subr.bf16.mxu0 %v4010_v30 }
 0x275   : > { %3665 = vmatpush3.bf16.msra.mxu0 %v4010_v30 }
 0x276   : > { %3666 = vmatprep.subr.bf16.mxu0 %v4011_v32 }
 0x277   : > { %3627 = vmatmul.mubr.msk.bf16.vlgmr.msra.gmra.mrb[36].mxu1 %vm923_vm1, %v4956_v28 }
 0x278   : > { %3637 = vmatpush3.bf16.msra.mxu1 %v915_v7  ;;  %3638 = vmatprep.mubr.msk.bf16.mxu1 %vm4390_vm0, %v4389_v24 }
 0x279   : > { %3648 = vmatprep.subr.bf16.mxu1 %v4389_v24  ;;  %3667 = vmatpush3.bf16.msra.mxu0 %v4011_v32 }
 0x27a   : > { %3668 = vmatprep.subr.bf16.mxu0 %v4012_v34 }
 0x27d   : > { %3669 = vmatpush3.bf16.msra.mxu0 %v4012_v34 }
 0x27e   : > { %3768 = vmatprep.subr.bf16.mxu0 %v4389_v24 }
 0x27f   : > { %3639 = vmatmul.mubr.msk.bf16.vlgmr.msra.gmra.mrb[40].mxu1 %vm923_vm1, %v4964_v29 }
 0x280   : > { %3649 = vmatpush3.bf16.msra.mxu1 %v917_v15  ;;  %3650 = vmatprep.mubr.msk.bf16.mxu1 %vm4390_vm0, %v4389_v24 }
 0x281   : > { %3702 = vmatprep.subr.bf16.mxu1 %v4389_v24 }
 0x287   : > { %3651 = vmatmul.mubr.msk.bf16.vlgmr.msra.gmra.mrb[44].mxu1 %vm923_vm1, %v4972_v33 }
 0x288   : > { %3704 = vmatprep.mubr.msk.bf16.mxu1 %vm4390_vm0, %v4389_v24 }
 0x2fa   : > { %v961_v36 = vpop.f32.mrb[32].mxu0 }
 0x2fb   : > { %v1710_v37 = vadd.f32 %v4979_v35, %v961_v36  ;;  %v3562_v40 = vpop.f32.mrb[33].mxu0 }
 0x2fc   : > { %v964_v41 = vpop.f32.mrb[34].mxu0 }
 0x2fd   : > { %v1711_v42 = vadd.f32 %v4979_v35, %v964_v41  ;;  %v3563_v43 = vpop.f32.mrb[35].mxu0  ;;  %v1742_v44 = vmax.f32 %v1710_v37, 0.0 }
 0x2ff   : > { %v1743_v45 = vmax.f32 %v1711_v42, 0.0 }
 0x301   : > { %v1774_v47 = vpack.c.bf16 %v1743_v45, %v1742_v44 }
 0x302   : > { %v1010_v48 = vpop.f32.mrb[36].mxu0  ;;  %v1059_v49 = vpop.f32.mrb[0].mxu1 }
 0x303   : > { %v1712_v50 = vadd.f32 %v4979_v35, %v1010_v48  ;;  %v3568_v51 = vpop.f32.mrb[37].mxu0  ;;  %3670 = vmatprep.mubr.bf16.mxu0 %v1774_v47  ;;  %v1714_v52 = vadd.f32 %v4979_v35, %v1059_v49  ;;  %v3574_v54 = vpop.f32.mrb[1].mxu1 }
 0x304   : > { %v1013_v55 = vpop.f32.mrb[38].mxu0  ;;  %v1062_v56 = vpop.f32.mrb[2].mxu1 }
 0x305   : > { %v1713_v57 = vadd.f32 %v4979_v35, %v1013_v55  ;;  %v1746_v58 = vmax.f32 %v1714_v52, 0.0  ;;  %v1715_v59 = vadd.f32 %v4979_v35, %v1062_v56  ;;  %v3575_v61 = vpop.f32.mrb[3].mxu1  ;;  %v3569_v62 = vpop.f32.mrb[39].mxu0  ;;  %v1744_v63 = vmax.f32 %v1712_v50, 0.0 }
 0x307   : > { %v1745_v0 = vmax.f32 %v1713_v57, 0.0  ;;  %v1747_v1 = vmax.f32 %v1715_v59, 0.0 }
 0x309   : > { %v1775_v2 = vpack.c.bf16 %v1745_v0, %v1744_v63  ;;  %v1776_v4 = vpack.c.bf16 %v1747_v1, %v1746_v58 }
 0x30a   : > { %v1108_v5 = vpop.f32.mrb[4].mxu1 }
 0x30b   : > { %3671 = vmatmul.mubr.bf16.vlgmr.msra.gmra.mrb[48].mxu0 %v1775_v2  ;;  %v1716_v6 = vadd.f32 %v4979_v35, %v1108_v5  ;;  %v3580_v7 = vpop.f32.mrb[5].mxu1 }
 0x30c   : > { %v1111_v8 = vpop.f32.mrb[6].mxu1  ;;  %3674 = vmatprep.mubr.bf16.mxu0 %v1776_v4 }
 0x30d   : > { %v1748_v9 = vmax.f32 %v1716_v6, 0.0  ;;  %v1717_v12 = vadd.f32 %v4979_v35, %v1111_v8  ;;  %v3581_v13 = vpop.f32.mrb[7].mxu1 }
 0x30f   : > { %v1749_v14 = vmax.f32 %v1717_v12, 0.0 }
 0x311   : > { %v1777_v15 = vpack.c.bf16 %v1749_v14, %v1748_v9 }
 0x312   : > { %v1157_v16 = vpop.f32.mrb[8].mxu1 }
 0x313   : > { %3675 = vmatmul.mubr.bf16.gmra.mrb[52].mxu0 %v1777_v15  ;;  %v1718_v17 = vadd.f32 %v4979_v35, %v1157_v16  ;;  %v3586_v18 = vpop.f32.mrb[9].mxu1 }
 0x314   : > { %v1160_v21 = vpop.f32.mrb[10].mxu1 }
 0x315   : > { %v1750_v22 = vmax.f32 %v1718_v17, 0.0  ;;  %v1719_v25 = vadd.f32 %v4979_v35, %v1160_v21  ;;  %v3587_v26 = vpop.f32.mrb[11].mxu1 }
 0x317   : > { %v1751_v30 = vmax.f32 %v1719_v25, 0.0 }
 0x319   : > { %v1778_v32 = vpack.c.bf16 %v1751_v30, %v1750_v22 }
 0x31a   : > { %v1206_v34 = vpop.f32.mrb[12].mxu1 }
 0x31b   : > { %v1720_v36 = vadd.f32 %v4979_v35, %v1206_v34  ;;  %v3592_v37 = vpop.f32.mrb[13].mxu1  ;;  %3678 = vmatprep.mubr.bf16.mxu0 %v1778_v32 }
 0x31c   : > { %v1209_v40 = vpop.f32.mrb[14].mxu1 }
 0x31d   : > { %v1752_v41 = vmax.f32 %v1720_v36, 0.0  ;;  %v1721_v42 = vadd.f32 %v4979_v35, %v1209_v40  ;;  %v3593_v43 = vpop.f32.mrb[15].mxu1 }
 0x31f   : > { %v1753_v44 = vmax.f32 %v1721_v42, 0.0 }
 0x321   : > { %v1779_v45 = vpack.c.bf16 %v1753_v44, %v1752_v41 }
 0x322   : > { %v1255_v47 = vpop.f32.mrb[16].mxu1 }
 0x323   : > { %3679 = vmatmul.mubr.bf16.gmra.mrb[56].mxu0 %v1779_v45  ;;  %v1722_v48 = vadd.f32 %v4979_v35, %v1255_v47  ;;  %v3598_v49 = vpop.f32.mrb[17].mxu1 }
 0x324   : > { %v1258_v50 = vpop.f32.mrb[18].mxu1 }
 0x325   : > { %v1754_v51 = vmax.f32 %v1722_v48, 0.0  ;;  %v1723_v52 = vadd.f32 %v4979_v35, %v1258_v50  ;;  %v3599_v54 = vpop.f32.mrb[19].mxu1 }
 0x327   : > { %v1755_v55 = vmax.f32 %v1723_v52, 0.0 }
 0x329   : > { %v1780_v56 = vpack.c.bf16 %v1755_v55, %v1754_v51 }
 0x32a   : > { %v1304_v57 = vpop.f32.mrb[20].mxu1  ;;  %v1549_v58 = vpop.f32.mrb[40].mxu0 }
 0x32b   : > { %v1724_v59 = vadd.f32 %v4979_v35, %v1304_v57  ;;  %v3604_v61 = vpop.f32.mrb[21].mxu1  ;;  %3682 = vmatprep.mubr.bf16.mxu0 %v1780_v56  ;;  %v1734_v62 = vadd.f32 %v4979_v35, %v1549_v58  ;;  %v3634_v63 = vpop.f32.mrb[41].mxu0 }
 0x32c   : > { %v1307_v0 = vpop.f32.mrb[22].mxu1  ;;  %v1552_v1 = vpop.f32.mrb[42].mxu0 }
 0x32d   : > { %v1756_v2 = vmax.f32 %v1724_v59, 0.0  ;;  %v1725_v4 = vadd.f32 %v4979_v35, %v1307_v0  ;;  %v3605_v5 = vpop.f32.mrb[23].mxu1  ;;  %v1766_v6 = vmax.f32 %v1734_v62, 0.0  ;;  %v1735_v7 = vadd.f32 %v4979_v35, %v1552_v1  ;;  %v3635_v8 = vpop.f32.mrb[43].mxu0 }
 0x32f   : > { %v1757_v9 = vmax.f32 %v1725_v4, 0.0  ;;  %v1767_v12 = vmax.f32 %v1735_v7, 0.0 }
 0x331   : > { %v1781_v13 = vpack.c.bf16 %v1757_v9, %v1756_v2  ;;  %v1786_v14 = vpack.c.bf16 %v1767_v12, %v1766_v6 }
 0x332   : > { %v1353_v15 = vpop.f32.mrb[24].mxu1  ;;  %v1647_v16 = vpop.f32.mrb[44].mxu0 }
 0x333   : > { %3683 = vmatmul.mubr.bf16.gmra.mrb[60].mxu0 %v1781_v13  ;;  %v1726_v17 = vadd.f32 %v4979_v35, %v1353_v15  ;;  %v3610_v18 = vpop.f32.mrb[25].mxu1  ;;  %v1738_v21 = vadd.f32 %v4979_v35, %v1647_v16  ;;  %v3646_v22 = vpop.f32.mrb[45].mxu0 }
 0x334   : > { %v1356_v25 = vpop.f32.mrb[26].mxu1  ;;  %v1650_v26 = vpop.f32.mrb[46].mxu0 }
 0x335   : > { %v1758_v30 = vmax.f32 %v1726_v17, 0.0  ;;  %v1727_v32 = vadd.f32 %v4979_v35, %v1356_v25  ;;  %v3611_v34 = vpop.f32.mrb[27].mxu1  ;;  %v1770_v36 = vmax.f32 %v1738_v21, 0.0  ;;  %v1739_v37 = vadd.f32 %v4979_v35, %v1650_v26  ;;  %v3647_v40 = vpop.f32.mrb[47].mxu0 }
 0x337   : > { %v1759_v41 = vmax.f32 %v1727_v32, 0.0  ;;  %v1771_v42 = vmax.f32 %v1739_v37, 0.0 }
 0x339   : > { %v1782_v43 = vpack.c.bf16 %v1759_v41, %v1758_v30  ;;  %v1788_v44 = vpack.c.bf16 %v1771_v42, %v1770_v36 }
 0x33a   : > { %v1402_v45 = vpop.f32.mrb[28].mxu1 }
 0x33b   : > { %v1728_v47 = vadd.f32 %v4979_v35, %v1402_v45  ;;  %v3616_v48 = vpop.f32.mrb[29].mxu1  ;;  %3686 = vmatprep.mubr.bf16.mxu0 %v1782_v43 }
 0x33c   : > { %v1405_v49 = vpop.f32.mrb[30].mxu1 }
 0x33d   : > { %v1760_v50 = vmax.f32 %v1728_v47, 0.0  ;;  %v1729_v51 = vadd.f32 %v4979_v35, %v1405_v49  ;;  %v3617_v52 = vpop.f32.mrb[31].mxu1 }
 0x33f   : > { %v1761_v54 = vmax.f32 %v1729_v51, 0.0 }
 0x341   : > { %v1783_v55 = vpack.c.bf16 %v1761_v54, %v1760_v50 }
 0x342   : > { %v1451_v56 = vpop.f32.mrb[32].mxu1 }
 0x343   : > { %3687 = vmatmul.mubr.bf16.gmra.mrb[64].mxu0 %v1783_v55  ;;  %v1730_v57 = vadd.f32 %v4979_v35, %v1451_v56  ;;  %v3622_v58 = vpop.f32.mrb[33].mxu1 }
 0x344   : > { %v1454_v59 = vpop.f32.mrb[34].mxu1 }
 0x345   : > { %v1762_v61 = vmax.f32 %v1730_v57, 0.0  ;;  %v1731_v62 = vadd.f32 %v4979_v35, %v1454_v59  ;;  %v3623_v63 = vpop.f32.mrb[35].mxu1 }
 0x347   : > { %v1763_v0 = vmax.f32 %v1731_v62, 0.0 }
 0x349   : > { %v1784_v1 = vpack.c.bf16 %v1763_v0, %v1762_v61 }
 0x34a   : > { %v1500_v2 = vpop.f32.mrb[36].mxu1 }
 0x34b   : > { %v1732_v4 = vadd.f32 %v4979_v35, %v1500_v2  ;;  %v3628_v5 = vpop.f32.mrb[37].mxu1  ;;  %3690 = vmatprep.mubr.bf16.mxu0 %v1784_v1 }
 0x34c   : > { %v1503_v6 = vpop.f32.mrb[38].mxu1 }
 0x34d   : > { %v1764_v7 = vmax.f32 %v1732_v4, 0.0  ;;  %v1733_v8 = vadd.f32 %v4979_v35, %v1503_v6  ;;  %v3629_v9 = vpop.f32.mrb[39].mxu1 }
 0x34f   : > { %v1765_v12 = vmax.f32 %v1733_v8, 0.0 }
 0x351   : > { %v1785_v13 = vpack.c.bf16 %v1765_v12, %v1764_v7 }
 0x352   : > { %v1598_v15 = vpop.f32.mrb[40].mxu1 }
 0x353   : > { %3691 = vmatmul.mubr.bf16.gmra.mrb[68].mxu0 %v1785_v13  ;;  %v1736_v16 = vadd.f32 %v4979_v35, %v1598_v15  ;;  %v3640_v17 = vpop.f32.mrb[41].mxu1 }
 0x354   : > { %v1601_v18 = vpop.f32.mrb[42].mxu1  ;;  %3694 = vmatprep.mubr.bf16.mxu0 %v1786_v14 }
 0x355   : > { %v1768_v21 = vmax.f32 %v1736_v16, 0.0  ;;  %v1737_v22 = vadd.f32 %v4979_v35, %v1601_v18  ;;  %v3641_v25 = vpop.f32.mrb[43].mxu1 }
 0x357   : > { %v1769_v26 = vmax.f32 %v1737_v22, 0.0 }
 0x359   : > { %v1787_v30 = vpack.c.bf16 %v1769_v26, %v1768_v21 }
 0x35a   : > { %v1696_v32 = vpop.f32.mrb[44].mxu1 }
 0x35b   : > { %3695 = vmatmul.mubr.bf16.gmra.mrb[72].mxu0 %v1787_v30  ;;  %v1740_v34 = vadd.f32 %v4979_v35, %v1696_v32  ;;  %v3652_v36 = vpop.f32.mrb[45].mxu1  ;;  %v4017_v30 = vld [vmem:[#allocation11 + $0x8] sm:$0xff]   ;;  %v4020_v32 = vld [vmem:[#allocation11 + $0x20] sm:$0xff]  }
 0x35c   : > { %v1699_v37 = vpop.f32.mrb[46].mxu1  ;;  %3698 = vmatprep.mubr.bf16.mxu0 %v1788_v44 }
 0x35d   : > { %v1772_v40 = vmax.f32 %v1740_v34, 0.0  ;;  %v1741_v41 = vadd.f32 %v4979_v35, %v1699_v37  ;;  %v3653_v42 = vpop.f32.mrb[47].mxu1  ;;  %v5097_v34 = vld [vmem:[#allocation10 + $0x1] ss:$0 sm:$0xff]  ;;  %v4021_v37 = vld [vmem:[#allocation11 + $0x28] sm:$0xff]  }
 0x35f   : > { %v1773_v43 = vmax.f32 %v1741_v41, 0.0 }
 0x361   : > { %v1789_v45 = vpack.c.bf16 %v1773_v43, %v1772_v40 }
 0x363   : > { %3699 = vmatmul.mubr.bf16.gmra.mrb[76].mxu0 %v1789_v45 }
 0x364   : > { %3770 = vmatprep.mubr.msk.bf16.mxu0 %vm4390_vm0, %v4389_v24 }
 0x3de   : > { %v3672_v14 = vpop.f32.mrb[48].mxu0 }
 0x3df   : > { %v1889_v47 = vpop.f32.mrb[49].mxu0 }
 0x3e0   : > { %v3673_v48 = vpop.f32.mrb[50].mxu0 }
 0x3e1   : > { %v2017_v49 = vpack.c.bf16 %v3673_v48, %v3672_v14  ;;  %v1892_v50 = vpop.f32.mrb[51].mxu0 }
 0x3e2   : > { %v2016_v51 = vpack.c.bf16 %v1892_v50, %v1889_v47 }
 0x3e4   : > { %3703 = vmatpush3.bf16.msra.mxu1 %v2016_v51 }
 0x3e5   : > { %3708 = vmatprep.subr.bf16.mxu1 %v4389_v24 }
 0x3e6   : > { %v3676_v44 = vpop.f32.mrb[52].mxu0 }
 0x3e7   : > { %3705 = vmatmul.mubr.msk.bf16.vlgmr.msra.gmra.mrb[48].mxu1 %vm923_vm1, %v4851_v31  ;;  %v1905_v35 = vpop.f32.mrb[53].mxu0 }
 0x3e8   : > { %3709 = vmatpush3.bf16.msra.mxu1 %v2017_v49  ;;  %3710 = vmatprep.mubr.msk.bf16.mxu1 %vm4390_vm0, %v4389_v24  ;;  %v3677_v52 = vpop.f32.mrb[54].mxu0 }
 0x3e9   : > { %v2019_v54 = vpack.c.bf16 %v3677_v52, %v3676_v44  ;;  %v1908_v55 = vpop.f32.mrb[55].mxu0  ;;  %3714 = vmatprep.subr.bf16.mxu1 %v4389_v24 }
 0x3ea   : > { %v2018_v56 = vpack.c.bf16 %v1908_v55, %v1905_v35 }
 0x3ef   : > { %3711 = vmatmul.mubr.msk.bf16.vlgmr.msra.gmra.mrb[52].mxu1 %vm923_vm1, %v4860_v38 }
 0x3f0   : > { %3715 = vmatpush3.bf16.msra.mxu1 %v2018_v56  ;;  %3716 = vmatprep.mubr.msk.bf16.mxu1 %vm4390_vm0, %v4389_v24 }
 0x3f1   : > { %3720 = vmatprep.subr.bf16.mxu1 %v4389_v24 }
 0x3f6   : > { %v3680_v31 = vpop.f32.mrb[56].mxu0 }
 0x3f7   : > { %3717 = vmatmul.mubr.msk.bf16.vlgmr.msra.gmra.mrb[56].mxu1 %vm923_vm1, %v4863_v39  ;;  %v1921_v57 = vpop.f32.mrb[57].mxu0 }
 0x3f8   : > { %3721 = vmatpush3.bf16.msra.mxu1 %v2019_v54  ;;  %3722 = vmatprep.mubr.msk.bf16.mxu1 %vm4390_vm0, %v4389_v24  ;;  %v3681_v58 = vpop.f32.mrb[58].mxu0 }
 0x3f9   : > { %v2021_v59 = vpack.c.bf16 %v3681_v58, %v3680_v31  ;;  %v1924_v61 = vpop.f32.mrb[59].mxu0  ;;  %3726 = vmatprep.subr.bf16.mxu1 %v4389_v24 }
 0x3fa   : > { %v2020_v38 = vpack.c.bf16 %v1924_v61, %v1921_v57 }
 0x3ff   : > { %3723 = vmatmul.mubr.msk.bf16.vlgmr.msra.gmra.mrb[60].mxu1 %vm923_vm1, %v4876_v46 }
 0x400   : > { %3727 = vmatpush3.bf16.msra.mxu1 %v2020_v38  ;;  %3728 = vmatprep.mubr.msk.bf16.mxu1 %vm4390_vm0, %v4389_v24 }
 0x401   : > { %3732 = vmatprep.subr.bf16.mxu1 %v4389_v24 }
 0x406   : > { %v3684_v39 = vpop.f32.mrb[60].mxu0 }
 0x407   : > { %3729 = vmatmul.mubr.msk.bf16.vlgmr.msra.gmra.mrb[64].mxu1 %vm923_vm1, %v4884_v53  ;;  %v1937_v62 = vpop.f32.mrb[61].mxu0 }
 0x408   : > { %3733 = vmatpush3.bf16.msra.mxu1 %v2021_v59  ;;  %3734 = vmatprep.mubr.msk.bf16.mxu1 %vm4390_vm0, %v4389_v24  ;;  %v3685_v63 = vpop.f32.mrb[62].mxu0 }
 0x409   : > { %v2023_v0 = vpack.c.bf16 %v3685_v63, %v3684_v39  ;;  %v1940_v1 = vpop.f32.mrb[63].mxu0  ;;  %3738 = vmatprep.subr.bf16.mxu1 %v4389_v24 }
 0x40a   : > { %v2022_v46 = vpack.c.bf16 %v1940_v1, %v1937_v62 }
 0x40f   : > { %3735 = vmatmul.mubr.msk.bf16.vlgmr.msra.gmra.mrb[68].mxu1 %vm923_vm1, %v4892_v60 }
 0x410   : > { %3739 = vmatpush3.bf16.msra.mxu1 %v2022_v46  ;;  %3740 = vmatprep.mubr.msk.bf16.mxu1 %vm4390_vm0, %v4389_v24 }
 0x411   : > { %3744 = vmatprep.subr.bf16.mxu1 %v4389_v24 }
 0x416   : > { %v3688_v53 = vpop.f32.mrb[64].mxu0 }
 0x417   : > { %3741 = vmatmul.mubr.msk.bf16.vlgmr.msra.gmra.mrb[72].mxu1 %vm923_vm1, %v4903_v3  ;;  %v1953_v2 = vpop.f32.mrb[65].mxu0 }
 0x418   : > { %3745 = vmatpush3.bf16.msra.mxu1 %v2023_v0  ;;  %3746 = vmatprep.mubr.msk.bf16.mxu1 %vm4390_vm0, %v4389_v24  ;;  %v3689_v4 = vpop.f32.mrb[66].mxu0 }
 0x419   : > { %v2025_v5 = vpack.c.bf16 %v3689_v4, %v3688_v53  ;;  %v1956_v6 = vpop.f32.mrb[67].mxu0  ;;  %3750 = vmatprep.subr.bf16.mxu1 %v4389_v24 }
 0x41a   : > { %v2024_v60 = vpack.c.bf16 %v1956_v6, %v1953_v2 }
 0x41f   : > { %3747 = vmatmul.mubr.msk.bf16.vlgmr.msra.gmra.mrb[76].mxu1 %vm923_vm1, %v4911_v10 }
 0x420   : > { %3751 = vmatpush3.bf16.msra.mxu1 %v2024_v60  ;;  %3752 = vmatprep.mubr.msk.bf16.mxu1 %vm4390_vm0, %v4389_v24 }
 0x421   : > { %3756 = vmatprep.subr.bf16.mxu1 %v4389_v24 }
 0x426   : > { %v3692_v3 = vpop.f32.mrb[68].mxu0 }
 0x427   : > { %3753 = vmatmul.mubr.msk.bf16.vlgmr.msra.gmra.mrb[80].mxu1 %vm923_vm1, %v4927_v19  ;;  %v1969_v7 = vpop.f32.mrb[69].mxu0 }
 0x428   : > { %3757 = vmatpush3.bf16.msra.mxu1 %v2025_v5  ;;  %3758 = vmatprep.mubr.msk.bf16.mxu1 %vm4390_vm0, %v4389_v24  ;;  %v3693_v8 = vpop.f32.mrb[70].mxu0 }
 0x429   : > { %v2027_v9 = vpack.c.bf16 %v3693_v8, %v3692_v3  ;;  %v1972_v12 = vpop.f32.mrb[71].mxu0  ;;  %3762 = vmatprep.subr.bf16.mxu1 %v4389_v24 }
 0x42a   : > { %v2026_v10 = vpack.c.bf16 %v1972_v12, %v1969_v7 }
 0x42b   : > { %3769 = vmatpush3.bf16.msra.mxu0 %v2027_v9 }
 0x42c   : > { %3780 = vmatprep.subr.bf16.mxu0 %v4389_v24 }
 0x42e   : > { %v3696_v13 = vpop.f32.mrb[72].mxu0  ;;  %3771 = vmatmul.mubr.msk.bf16.vlgmr.msra.gmra.mrb[80].mxu0 %vm923_vm1, %v4956_v28 }
 0x42f   : > { %3759 = vmatmul.mubr.msk.bf16.vlgmr.msra.gmra.mrb[84].mxu1 %vm923_vm1, %v4940_v23  ;;  %v1985_v19 = vpop.f32.mrb[73].mxu0  ;;  %3782 = vmatprep.mubr.msk.bf16.mxu0 %vm4390_vm0, %v4389_v24 }
 0x430   : > { %3763 = vmatpush3.bf16.msra.mxu1 %v2026_v10  ;;  %3764 = vmatprep.mubr.msk.bf16.mxu1 %vm4390_vm0, %v4389_v24  ;;  %v3697_v15 = vpop.f32.mrb[74].mxu0 }
 0x431   : > { %v2029_v16 = vpack.c.bf16 %v3697_v15, %v3696_v13  ;;  %v1988_v17 = vpop.f32.mrb[75].mxu0  ;;  %3774 = vmatprep.subr.bf16.mxu1 %v4389_v24 }
 0x432   : > { %v2028_v18 = vpack.c.bf16 %v1988_v17, %v1985_v19 }
 0x433   : > { %3781 = vmatpush3.bf16.msra.mxu0 %v2029_v16 }
 0x434   : > { %3792 = vmatprep.subr.bf16.mxu0 %v4389_v24 }
 0x436   : > { %v3700_v28 = vpop.f32.mrb[76].mxu0  ;;  %3783 = vmatmul.mubr.msk.bf16.vlgmr.msra.gmra.mrb[84].mxu0 %vm923_vm1, %v4964_v29  ;;  %v4016_v29 = vld [vmem:[#allocation11] sm:$0xff]  }
 0x437   : > { %3765 = vmatmul.mubr.msk.bf16.vlgmr.msra.gmra.mrb[88].mxu1 %vm923_vm1, %v4948_v27  ;;  %v2001_v23 = vpop.f32.mrb[77].mxu0  ;;  %3794 = vmatprep.mubr.msk.bf16.mxu0 %vm4390_vm0, %v4389_v24  ;;  %v4015_v27 = vld [vmem:[%s4814_s23 + $0x4] ss:$8 sps:$4 sm:$0xff]  }
 0x438   : > { %3775 = vmatpush3.bf16.msra.mxu1 %v2028_v18  ;;  %3776 = vmatprep.mubr.msk.bf16.mxu1 %vm4390_vm0, %v4389_v24  ;;  %v3701_v21 = vpop.f32.mrb[78].mxu0 }
 0x439   : > { %v2031_v22 = vpack.c.bf16 %v3701_v21, %v3700_v28  ;;  %v2004_v25 = vpop.f32.mrb[79].mxu0  ;;  %3786 = vmatprep.subr.bf16.mxu1 %v4389_v24 }
 0x43a   : > { %v2030_v26 = vpack.c.bf16 %v2004_v25, %v2001_v23 }
 0x43b   : > { %3793 = vmatpush3.bf16.msra.mxu0 %v2031_v22 }
 0x43c   : > { %3798 = vmatprep.subr.bf16.mxu0 %v4389_v24 }
 0x43e   : > { %3795 = vmatmul.mubr.msk.bf16.vlgmr.msra.gmra.mrb[88].mxu0 %vm923_vm1, %v4972_v33  ;;  %v4018_v33 = vld [vmem:[#allocation11 + $0x10] sm:$0xff]  }
 0x43f   : > { %3777 = vmatmul.mubr.msk.bf16.vlgmr.msra.gmra.mrb[92].mxu1 %vm923_vm1, %v4914_v11  ;;  %3814 = vmatprep.mubr.msk.bf16.mxu0 %vm4390_vm0, %v4389_v24  ;;  %v4019_v11 = vld [vmem:[#allocation11 + $0x18] sm:$0xff]  }
 0x440   : > { %3787 = vmatpush3.bf16.msra.mxu1 %v2030_v26  ;;  %3788 = vmatprep.mubr.msk.bf16.mxu1 %vm4390_vm0, %v4389_v24 }
 0x441   : > { %3799 = vmatpush3.bf16.msra.mxu0 %v4016_v29 }
 0x442   : > { %3800 = vmatprep.subr.bf16.mxu0 %v4389_v24 }
 0x445   : > { %3801 = vmatpush3.bf16.msra.mxu0 %v4017_v30 }
 0x446   : > { %3802 = vmatprep.subr.bf16.mxu0 %v4389_v24 }
 0x447   : > { %3789 = vmatmul.mubr.msk.bf16.vlgmr.msra.gmra.mrb[96].mxu1 %vm923_vm1, %v4930_v20 }
 0x448   : > { %2788 = vmatprep.mubr.bf16.mxu1 %v4015_v27 }
 0x449   : > { %3803 = vmatpush3.bf16.msra.mxu0 %v4018_v33 }
 0x44a   : > { %3804 = vmatprep.subr.bf16.mxu0 %v4389_v24 }
 0x44d   : > { %3805 = vmatpush3.bf16.msra.mxu0 %v4019_v11 }
 0x44e   : > { %3806 = vmatprep.subr.bf16.mxu0 %v4389_v24 }
 0x451   : > { %3807 = vmatpush3.bf16.msra.mxu0 %v4020_v32 }
 0x452   : > { %3808 = vmatprep.subr.bf16.mxu0 %v4389_v24 }
 0x455   : > { %3809 = vmatpush3.bf16.msra.mxu0 %v4021_v37 }
 0x456   : > { %3810 = vmatprep.subr.bf16.mxu0 %v4389_v24 }
 0x4ba   : > { %v2066_v20 = vpop.f32.mrb[48].mxu1 }
 0x4bb   : > { %v3706_v36 = vpop.f32.mrb[49].mxu1  ;;  %v5101_v41 = vadd.f32 %v5097_v34, %v2066_v20 }
 0x4bc   : > { %v2069_v40 = vpop.f32.mrb[50].mxu1 }
 0x4bd   : > { %v5104_v42 = vadd.f32 %v5097_v34, %v2069_v40  ;;  %v3707_v43 = vpop.f32.mrb[51].mxu1 }
 0x4bf   : > { %v2728_v45 = vpack.c.bf16 %v5104_v42, %v5101_v41 }
 0x4c2   : > { %v2107_v14 = vpop.f32.mrb[52].mxu1 }
 0x4c3   : > { %v3712_v47 = vpop.f32.mrb[53].mxu1  ;;  %v5110_v49 = vadd.f32 %v5097_v34, %v2107_v14 }
 0x4c4   : > { %v2110_v48 = vpop.f32.mrb[54].mxu1 }
 0x4c5   : > { %v5113_v50 = vadd.f32 %v5097_v34, %v2110_v48  ;;  %v3713_v51 = vpop.f32.mrb[55].mxu1 }
 0x4c7   : > { %v2729_v44 = vpack.c.bf16 %v5113_v50, %v5110_v49 }
 0x4ca   : > { %v2148_v35 = vpop.f32.mrb[56].mxu1 }
 0x4cb   : > { %v3718_v52 = vpop.f32.mrb[57].mxu1  ;;  %v5118_v55 = vadd.f32 %v5097_v34, %v2148_v35 }
 0x4cc   : > { %v2151_v54 = vpop.f32.mrb[58].mxu1 }
 0x4cd   : > { %v5121_v56 = vadd.f32 %v5097_v34, %v2151_v54  ;;  %v3719_v31 = vpop.f32.mrb[59].mxu1 }
 0x4cf   : > { %v2730_v57 = vpack.c.bf16 %v5121_v56, %v5118_v55 }
 0x4d2   : > { %v2189_v58 = vpop.f32.mrb[60].mxu1 }
 0x4d3   : > { %v3724_v59 = vpop.f32.mrb[61].mxu1  ;;  %v5126_v38 = vadd.f32 %v5097_v34, %v2189_v58 }
 0x4d4   : > { %v2192_v61 = vpop.f32.mrb[62].mxu1 }
 0x4d5   : > { %v5129_v39 = vadd.f32 %v5097_v34, %v2192_v61  ;;  %v3725_v62 = vpop.f32.mrb[63].mxu1 }
 0x4d7   : > { %v2731_v63 = vpack.c.bf16 %v5129_v39, %v5126_v38  ;;  %v4013_v39 = vld [vmem:[%s4814_s23] ss:$8 sps:$4 sm:$0xff]  }
 0x4da   : > { %v2230_v0 = vpop.f32.mrb[64].mxu1 }
 0x4db   : > { %v3730_v1 = vpop.f32.mrb[65].mxu1  ;;  %v5134_v53 = vadd.f32 %v5097_v34, %v2230_v0 }
 0x4dc   : > { %v2233_v46 = vpop.f32.mrb[66].mxu1 }
 0x4dd   : > { %v5137_v2 = vadd.f32 %v5097_v34, %v2233_v46  ;;  %v3731_v4 = vpop.f32.mrb[67].mxu1 }
 0x4df   : > { %v2732_v5 = vpack.c.bf16 %v5137_v2, %v5134_v53  ;;  %v4024_v53 = vld [vmem:[#allocation14] sm:$0xff]   ;;  %v4025_v2 = vld [vmem:[#allocation14 + $0x8] sm:$0xff]  }
 0x4e2   : > { %v2271_v6 = vpop.f32.mrb[68].mxu1 }
 0x4e3   : > { %v3736_v60 = vpop.f32.mrb[69].mxu1  ;;  %v5142_v7 = vadd.f32 %v5097_v34, %v2271_v6 }
 0x4e4   : > { %v2274_v3 = vpop.f32.mrb[70].mxu1 }
 0x4e5   : > { %v5145_v8 = vadd.f32 %v5097_v34, %v2274_v3  ;;  %v3737_v9 = vpop.f32.mrb[71].mxu1 }
 0x4e7   : > { %v2733_v12 = vpack.c.bf16 %v5145_v8, %v5142_v7  ;;  %v4027_v7 = vld [vmem:[#allocation14 + $0x18] sm:$0xff]   ;;  %v4028_v8 = vld [vmem:[#allocation14 + $0x20] sm:$0xff]  }
 0x4ea   : > { %v2312_v10 = vpop.f32.mrb[72].mxu1 }
 0x4eb   : > { %v3742_v13 = vpop.f32.mrb[73].mxu1  ;;  %v5150_v15 = vadd.f32 %v5097_v34, %v2312_v10 }
 0x4ec   : > { %v2315_v19 = vpop.f32.mrb[74].mxu1 }
 0x4ed   : > { %v5153_v16 = vadd.f32 %v5097_v34, %v2315_v19  ;;  %v3743_v17 = vpop.f32.mrb[75].mxu1 }
 0x4ef   : > { %v2734_v18 = vpack.c.bf16 %v5153_v16, %v5150_v15 }
 0x4f2   : > { %v2353_v28 = vpop.f32.mrb[76].mxu1 }
 0x4f3   : > { %v3748_v23 = vpop.f32.mrb[77].mxu1  ;;  %v5158_v22 = vadd.f32 %v5097_v34, %v2353_v28 }
 0x4f4   : > { %v2356_v21 = vpop.f32.mrb[78].mxu1 }
 0x4f5   : > { %v5161_v25 = vadd.f32 %v5097_v34, %v2356_v21  ;;  %v3749_v26 = vpop.f32.mrb[79].mxu1 }
 0x4f7   : > { %v2735_v27 = vpack.c.bf16 %v5161_v25, %v5158_v22 }
 0x4fa   : > { %v2394_v29 = vpop.f32.mrb[80].mxu1 }
 0x4fb   : > { %v3754_v30 = vpop.f32.mrb[81].mxu1  ;;  %v2712_v11 = vadd.f32 %v5097_v34, %v2394_v29 }
 0x4fc   : > { %v2397_v33 = vpop.f32.mrb[82].mxu1 }
 0x4fd   : > { %v2713_v32 = vadd.f32 %v5097_v34, %v2397_v33  ;;  %v3755_v20 = vpop.f32.mrb[83].mxu1 }
 0x4ff   : > { %v2736_v36 = vpack.c.bf16 %v2713_v32, %v2712_v11 }
 0x501   : > { %3470 = vmatprep.subr.bf16.mxu1 %v2736_v36  ;;  %v2517_v37 = vpop.f32.mrb[80].mxu0 }
 0x502   : > { %v2435_v40 = vpop.f32.mrb[84].mxu1  ;;  %3471 = vmatpush3.bf16.msra.mxu1 %v2728_v45  ;;  %v2718_v41 = vadd.f32 %v5097_v34, %v2517_v37  ;;  %v3772_v42 = vpop.f32.mrb[81].mxu0 }
 0x503   : > { %v3760_v43 = vpop.f32.mrb[85].mxu1  ;;  %v2520_v14 = vpop.f32.mrb[82].mxu0  ;;  %v2714_v35 = vadd.f32 %v5097_v34, %v2435_v40  ;;  %v4031_v42 = vld [vmem:[#allocation14 + $0x38] sm:$0xff]  }
 0x504   : > { %v2438_v47 = vpop.f32.mrb[86].mxu1  ;;  %v2719_v48 = vadd.f32 %v5097_v34, %v2520_v14  ;;  %v3773_v51 = vpop.f32.mrb[83].mxu0  ;;  %v3329_v43 = vld [vmem:[#allocation13] ss:$0 sm:$0xff] }
 0x505   : > { %v2715_v52 = vadd.f32 %v5097_v34, %v2438_v47  ;;  %v3761_v54 = vpop.f32.mrb[87].mxu1 }
 0x506   : > { %v2739_v31 = vpack.c.bf16 %v2719_v48, %v2718_v41  ;;  %v4030_v41 = vld [vmem:[#allocation14 + $0x30] sm:$0xff]  }
 0x507   : > { %v2737_v58 = vpack.c.bf16 %v2715_v52, %v2714_v35 }
 0x509   : > { %3472 = vmatprep.subr.bf16.mxu1 %v2737_v58  ;;  %v2599_v59 = vpop.f32.mrb[84].mxu0 }
 0x50a   : > { %v2476_v61 = vpop.f32.mrb[88].mxu1  ;;  %3473 = vmatpush3.bf16.msra.mxu1 %v2729_v44  ;;  %v2722_v45 = vadd.f32 %v5097_v34, %v2599_v59  ;;  %v3784_v62 = vpop.f32.mrb[85].mxu0  ;;  %v3338_v59 = vld [vmem:[#allocation16] ss:$0 sm:$0xff] }
 0x50b   : > { %v3766_v0 = vpop.f32.mrb[89].mxu1  ;;  %v2602_v1 = vpop.f32.mrb[86].mxu0  ;;  %v2716_v60 = vadd.f32 %v5097_v34, %v2476_v61 }
 0x50c   : > { %v2479_v46 = vpop.f32.mrb[90].mxu1  ;;  %v2723_v4 = vadd.f32 %v5097_v34, %v2602_v1  ;;  %v3785_v6 = vpop.f32.mrb[87].mxu0 }
 0x50d   : > { %v2717_v3 = vadd.f32 %v5097_v34, %v2479_v46  ;;  %v3767_v9 = vpop.f32.mrb[91].mxu1 }
 0x50e   : > { %v2741_v10 = vpack.c.bf16 %v2723_v4, %v2722_v45 }
 0x50f   : > { %v2738_v13 = vpack.c.bf16 %v2717_v3, %v2716_v60 }
 0x511   : > { %3474 = vmatprep.subr.bf16.mxu1 %v2738_v13  ;;  %v2681_v19 = vpop.f32.mrb[88].mxu0 }
 0x512   : > { %3475 = vmatpush3.bf16.msra.mxu1 %v2730_v57  ;;  %v2558_v49 = vpop.f32.mrb[92].mxu1  ;;  %v2726_v50 = vadd.f32 %v5097_v34, %v2681_v19  ;;  %v3796_v44 = vpop.f32.mrb[89].mxu0 }
 0x513   : > { %v3778_v17 = vpop.f32.mrb[93].mxu1  ;;  %3476 = vmatprep.subr.bf16.mxu1 %v2739_v31  ;;  %v2684_v28 = vpop.f32.mrb[90].mxu0  ;;  %v2720_v29 = vadd.f32 %v5097_v34, %v2558_v49 }
 0x514   : > { %v2561_v23 = vpop.f32.mrb[94].mxu1  ;;  %v2727_v21 = vadd.f32 %v5097_v34, %v2684_v28  ;;  %v3797_v26 = vpop.f32.mrb[91].mxu0 }
 0x515   : > { %v2721_v30 = vadd.f32 %v5097_v34, %v2561_v23  ;;  %v3779_v33 = vpop.f32.mrb[95].mxu1 }
 0x516   : > { %3477 = vmatpush3.bf16.msra.mxu1 %v2731_v63  ;;  %v2743_v55 = vpack.c.bf16 %v2727_v21, %v2726_v50  ;;  %v4023_v63 = vld [vmem:[#allocation11 + $0x38] sm:$0xff]  }
 0x517   : > { %v2740_v56 = vpack.c.bf16 %v2721_v30, %v2720_v29 }
 0x519   : > { %3478 = vmatprep.subr.bf16.mxu1 %v2740_v56 }
 0x51a   : > { %3479 = vmatpush3.bf16.msra.mxu1 %v2732_v5  ;;  %v2640_v57 = vpop.f32.mrb[96].mxu1  ;;  %v4026_v5 = vld [vmem:[#allocation14 + $0x10] sm:$0xff]  }
 0x51b   : > { %3480 = vmatprep.subr.bf16.mxu1 %v2741_v10  ;;  %v3790_v11 = vpop.f32.mrb[97].mxu1  ;;  %v2724_v20 = vadd.f32 %v5097_v34, %v2640_v57 }
 0x51c   : > { %v2643_v32 = vpop.f32.mrb[98].mxu1 }
 0x51d   : > { %v2725_v36 = vadd.f32 %v5097_v34, %v2643_v32  ;;  %v3791_v37 = vpop.f32.mrb[99].mxu1  ;;  %v4022_v34 = vld [vmem:[#allocation11 + $0x30] sm:$0xff]  }
 0x51e   : > { %3481 = vmatpush3.bf16.msra.mxu1 %v2733_v12  ;;  %3811 = vmatpush3.bf16.msra.mxu0 %v4022_v34  ;;  %v4029_v12 = vld [vmem:[#allocation14 + $0x28] sm:$0xff]  }
 0x51f   : > { %v2742_v38 = vpack.c.bf16 %v2725_v36, %v2724_v20  ;;  %3812 = vmatprep.subr.bf16.mxu0 %v4389_v24 }
 0x521   : > { %3482 = vmatprep.subr.bf16.mxu1 %v2742_v38 }
 0x522   : > { %3483 = vmatpush3.bf16.msra.mxu1 %v2734_v18  ;;  %3813 = vmatpush3.bf16.msra.mxu0 %v4023_v63 }
 0x523   : > { %3484 = vmatprep.subr.bf16.mxu1 %v2743_v55 }
 0x526   : > { %3485 = vmatpush3.bf16.msra.mxu1 %v2735_v27 }
 0x527   : > { %3818 = vmatprep.subr.bf16.mxu1 %v4389_v24 }
 0x529   : > { %2789 = vmatmul.mubr.bf16.vlgmr.msra.gmra.mrb[100].mxu1 %v4013_v39 }
 0x52a   : > { %3834 = vmatprep.mubr.msk.bf16.mxu1 %vm4390_vm0, %v4389_v24  ;;  %3819 = vmatpush3.bf16.msra.mxu1 %v4024_v53 }
 0x52b   : > { %3820 = vmatprep.subr.bf16.mxu1 %v4389_v24 }
 0x52e   : > { %3821 = vmatpush3.bf16.msra.mxu1 %v4025_v2 }
 0x52f   : > { %3822 = vmatprep.subr.bf16.mxu1 %v4389_v24 }
 0x532   : > { %3823 = vmatpush3.bf16.msra.mxu1 %v4026_v5 }
 0x533   : > { %3824 = vmatprep.subr.bf16.mxu1 %v4389_v24 }
 0x536   : > { %3825 = vmatpush3.bf16.msra.mxu1 %v4027_v7 }
 0x537   : > { %3826 = vmatprep.subr.bf16.mxu1 %v4389_v24 }
 0x53a   : > { %3827 = vmatpush3.bf16.msra.mxu1 %v4028_v8 }
 0x53b   : > { %3828 = vmatprep.subr.bf16.mxu1 %v4389_v24 }
 0x53e   : > { %3829 = vmatpush3.bf16.msra.mxu1 %v4029_v12 }
 0x53f   : > { %3830 = vmatprep.subr.bf16.mxu1 %v4389_v24 }
 0x542   : > { %3831 = vmatpush3.bf16.msra.mxu1 %v4030_v41 }
 0x543   : > { %3832 = vmatprep.subr.bf16.mxu1 %v4389_v24 }
 0x546   : > { %3833 = vmatpush3.bf16.msra.mxu1 %v4031_v42 }
 0x5fc   : > { %v3486_v15 = vpop.f32.mrb[100].mxu1 }
 0x5fd   : > { %v3487_v16 = vpop.f32.mrb[101].mxu1 }
 0x5fe   : > { %v3488_v18 = vadd.f32 %v3487_v16, %v3486_v15  ;;  %v3489_v22 = vpop.f32.mrb[102].mxu1 }
 0x5ff   : > { %v3490_v25 = vpop.f32.mrb[103].mxu1 }
 0x600   : > { %v3491_v27 = vadd.f32 %v3490_v25, %v3489_v22 }
 0x602   : > { %v2797_v40 = vpack.c.bf16 %v3491_v27, %v3488_v18 }
 0x604   : > { %3815 = vmatmul.mubr.bf16.vlgmr.msra.gmra.mrb[92].mxu0 %v2797_v40 }
 0x6d7   : > { %v2903_v14 = vpop.f32.mrb[92].mxu0 }
 0x6d8   : > { %v2904_v47 = vadd.f32 %v3329_v43, %v2903_v14  ;;  %v3816_v48 = vpop.f32.mrb[93].mxu0 }
 0x6d9   : > { %v2906_v51 = vpop.f32.mrb[94].mxu0 }
 0x6da   : > { %v2907_v35 = vadd.f32 %v3329_v43, %v2906_v51  ;;  %v3817_v52 = vpop.f32.mrb[95].mxu0  ;;  %v2910_v54 = vmax.f32 %v2904_v47, 0.0 }
 0x6dc   : > { %v2911_v31 = vmax.f32 %v2907_v35, 0.0 }
 0x6de   : > { %v2912_v58 = vpack.c.bf16 %v2911_v31, %v2910_v54 }
 0x6e0   : > { %3835 = vmatmul.mubr.bf16.vlgmr.msra.gmra.mrb[104].mxu1 %v2912_v58 }
 0x7b3   : > { %v3018_v24 = vpop.f32.mrb[104].mxu1 }
 0x7b4   : > { %v3019_v61 = vadd.f32 %v3338_v59, %v3018_v24  ;;  %v3836_v45 = vpop.f32.mrb[105].mxu1 }
 0x7b5   : > { %v3021_v62 = vpop.f32.mrb[106].mxu1 }
 0x7b6   : > { %3025 = vst [vmem:[%s512_s21] sm:$0xff] %v3019_v61  ;;  %v3022_v0 = vadd.f32 %v3338_v59, %v3021_v62  ;;  %v3837_v1 = vpop.f32.mrb[107].mxu1 }
 0x7b8   : > { %3026 = vst [vmem:[%s512_s21 + $0x8] sm:$0xff] %v3022_v0 }
 0x7b9   : > { %4303 = shalt.err (!%p4300_p10)
}
 0x7ba   : > { %s4304_s15 = scalar_lea.hbm %s5222_s14, 256  ;;  %s4308_s19 = scalar_lea.hbm %s5346_s20, 512 }
 0x7bb   : > { %p4305_p6 = scmp.ne.s32.totalorder %s5222_s14, %s4304_s15  ;;  %p4309_p9 = scmp.lt.u32.totalorder %s5222_s14, %s5346_s20 }
 0x7bc   : > { %p4310_p11 = scmp.lt.u32.totalorder %s4308_s19, %s4304_s15  ;;  %p4312_p0 = scmp.lt.u32.totalorder %s4304_s15, %s5222_s14 }
 0x7bd   : > { %p4306_p13 = pnand %p4305_p6, %p5347_p8 }
 0x7be   : > { %p4311_p3 = por %p4310_p11, %p4309_p9 }
 0x7bf   : > { %p4307_p5 = pneg %p4306_p13 }
 0x7c0   : > { %p4313_p2 = por %p4312_p0, %p4311_p3 }
 0x7c2   : > { %p4314_p4 = pnand %p4313_p2, %p4307_p5 }
 0x7c4   : > { %4317 = shalt.err (!%p4314_p4)
}
 0x7c5   : > { %s4392_s16 = smov 128   ;;  %s4393_s3 = smov 8  }
 0x7c6   : > { %3868 = dma.vmem_to_hbm [thread:$0]  (%p5347_p8), %s5217_s1, 256, %s5222_s14, %s3028_s29, %s4392_s16, %s4392_s16, %s4393_s3  }
 0x7c7 PF: > { %s5348_s22 = sld [smem:[#allocation24_spill]]  ;;  %s5349_s23 = sld [smem:[#allocation30_spill]] }
 0x7c8   : > { %p5351_p12 = scmp.ge.s32.totalorder %s4372_s12, 2 }
 0x7cd   : > { %s3056_s21 = sand.u32 1, %s5348_s22   ;;  %p5350_p7 = scmp.ne.s32.totalorder %s5349_s23, 0 }
 0x7ce   : > { %s3057_s7 = scalar_lea.sflag [#allocation4], %s3056_s21 }
 0x7cf   : > { %p3900_p1 = pnand %p5351_p12, %p5350_p7 }
 0x7d1   : > { %4355 = dma.done.wait (!%p3900_p1), %s3057_s7, 256  }
 0x7d2   : > { %4357 = vsyncadd (!%p3900_p1), %s3057_s7, 4294967040  ;;  %s5352_s12 = sld [smem:[#allocation27_spill]]  ;;  %s5353_s18 = sld [smem:[#allocation25_spill]] }
 0x7d3   : > { %s5354_s11 = sld [smem:[#allocation28_spill]]  ;;  %s5355_s30 = smov %s4364_s10 }
 0x7d8   : > { %p28_p10 = scmp.ge.s32.totalorder %s5352_s12, 4   ;;  %s5356_s10 = smov %s5353_s18 }
 0x7da   :  { %30 = sbr.rel (!%p28_p10) target bundleno = 16 (0x10), region = 151 }
 0x7e1   :  { %3062 = vsyncpa [#allocation3], 1 }
 0x7e2   :  { %3064 = vsyncpa [#allocation3 + $0x1], 1 }
 0x7e3   :  { %3065 = vsyncpa [#allocation6], 1 }
 0x7e4   :  { %3067 = vsyncpa [#allocation6 + $0x1], 1 }
 0x7e5   :  { %3068 = vsyncpa [#allocation9], 1 }
 0x7e6   :  { %3069 = vsyncpa [#allocation12], 1 }
 0x7e7   :  { %3070 = vsyncpa [#allocation15], 1 }
 0x7e8   :  { %3071 = vsyncpa [#allocation4], 1 }
 0x7e9   :  { %3073 = vsyncpa [#allocation4 + $0x1], 1 }

</bundles_post_ra>
